<compile_context>
chip_gen: v6e
topology: v6e:2x2x1
jax: 0.10.0
libtpu: 0.0.40
codegen_flags: <defaults>
</compile_context>

<pallas_src>
import numpy as np
import jax
import jax.numpy as jnp
from jax.experimental import pallas as pl
from jax.experimental.pallas import tpu as pltpu

BINS = 10
MOMENTUM = 0.02
LOSS_WEIGHT = 1.0

_LANE = 128
_MAX_TILE_ROWS = 1024  # (1024,128) f32 = 512 KiB / input / buffer; x3 inputs x2 bufs ~ 3 MiB VMEM

# PyTorch reference edges: arange(bins+1)/bins ; edges[-1] += 1e-6
_EDGES = [np.float32(i) / np.float32(BINS) for i in range(BINS + 1)]
_EDGES[-1] = np.float32(_EDGES[-1] + np.float32(1e-6))


def _ghmc_kernel(pred_ref, target_ref, lw_ref, acc_ref,
                 loss_ref, new_acc_ref,
                 cnt_ref, coef_ref):
    p = pl.program_id(0)            # 0 = counting pass, 1 = weighting pass
    t = pl.program_id(1)            # row-tile index
    n_tiles = pl.num_programs(1)

    # ---- common element-wise work (needed by both passes) ----
    pred = pred_ref[...].astype(jnp.float32)
    target = target_ref[...].astype(jnp.float32)
    lw = lw_ref[...].astype(jnp.float32)

    s = jax.nn.sigmoid(pred)                      # EUP; reused for g and the BCE log term
    g = jnp.abs(s - target)
    valid = lw > 0.0
    # Single float bin index; clamp keeps g == 1.0 in the last bin (matches
    # edges[-1] += 1e-6).  Invalid / padded elements get -1 so they match no bin.
    binf = jnp.where(
        valid,
        jnp.clip(jnp.floor(g * jnp.float32(BINS)), 0.0, jnp.float32(BINS - 1)),
        jnp.float32(-1.0),
    )

    # ---- pass 0: accumulate GLOBAL per-bin counts across all tiles ----
    @pl.when((p == 0) & (t == 0))
    def _init():
        for i in range(BINS):
            cnt_ref[i] = jnp.float32(0.0)

    @pl.when(p == 0)
    def _count():
        for i in range(BINS):
            cnt_ref[i] = cnt_ref[i] + jnp.sum(
                (binf == jnp.float32(i)).astype(jnp.float32))

    # ---- transition: momentum update of acc_sum + per-bin loss coefficients ----
    # tot == sum(counts) (every valid element falls in exactly one bin) and the
    # `2*tot/acc / n` weight divided by the final `/tot` collapses to
    # 2 / (acc_new * n), so `tot` never has to be materialized.
    @pl.when((p == 1) & (t == 0))
    def _transition():
        n = jnp.float32(0.0)
        per_bin = []
        for i in range(BINS):
            c = cnt_ref[i]
            has = c > 0.0
            acc_new = jnp.where(
                has,
                jnp.float32(MOMENTUM) * acc_ref[i] + jnp.float32(1.0 - MOMENTUM) * c,
                acc_ref[i],
            )
            new_acc_ref[i] = acc_new
            per_bin.append((has, acc_new))
            n = n + jnp.where(has, 1.0, 0.0)
        n = jnp.maximum(n, 1.0)
        for i, (has, acc_new) in enumerate(per_bin):
            coef_ref[i] = jnp.where(
                has, 2.0 / (jnp.maximum(acc_new, 1e-12) * n), 0.0)
        loss_ref[0] = jnp.float32(0.0)

    # ---- pass 1: weighted BCE-with-logits (reduction='sum', already /tot) ----
    @pl.when(p == 1)
    def _loss():
        w = jnp.zeros_like(pred)
        for i in range(BINS):
            # disjoint masks -> independent FMA-able accumulation (no select chain)
            w = w + (binf == jnp.float32(i)).astype(jnp.float32) * coef_ref[i]
        # log1p(exp(-|x|)) == -log(sigmoid(|x|)) == -log(where(x>=0, s, 1-s))
        bce = (jnp.maximum(pred, 0.0) - pred * target
               - jnp.log(jnp.where(pred >= 0.0, s, 1.0 - s)))
        loss_ref[0] = loss_ref[0] + jnp.sum(w * bce)

    @pl.when((p == 1) & (t == n_tiles - 1))
    def _finalize():
        loss_ref[0] = loss_ref[0] * jnp.float32(LOSS_WEIGHT)


def ghmc_loss(pred, target, label_weight, acc_sum):
    """Returns (loss scalar, updated acc_sum).  pred/target/label_weight must be same-shape."""
    # TODO(synk): _expand_binary_labels branch (pred.dim() != target.dim()) is not
    # implemented; callers must pass same-shape pred/target/label_weight.
    assert pred.shape == target.shape == label_weight.shape

    total = int(np.prod(pred.shape))
    rows_raw = -(-total // _LANE)                       # cdiv(total, 128)
    rows_aligned = ((rows_raw + 15) // 16) * 16         # multiple of 16 (safe for f32/bf16)
    tile_rows = min(_MAX_TILE_ROWS, rows_aligned)
    rows_pad = ((rows_raw + tile_rows - 1) // tile_rows) * tile_rows
    pad_elems = rows_pad * _LANE - total
    num_tiles = rows_pad // tile_rows

    def _prep(x):
        # keep caller dtype (bf16 inputs halve HBM traffic); cast to f32 in-kernel
        x = jnp.asarray(x).reshape(-1)
        x = jnp.pad(x, (0, pad_elems))                  # pads label_weight with 0 -> invalid
        return x.reshape(rows_pad, _LANE)

    pred2 = _prep(pred)
    target2 = _prep(target)
    lw2 = _prep(label_weight)
    acc_sum = jnp.asarray(acc_sum, jnp.float32)

    loss, new_acc = pl.pallas_call(
        _ghmc_kernel,
        out_shape=(
            jax.ShapeDtypeStruct((1,), jnp.float32),      # loss
            jax.ShapeDtypeStruct((BINS,), jnp.float32),   # updated acc_sum state
        ),
        grid=(2, num_tiles),
        in_specs=[
            pl.BlockSpec((tile_rows, _LANE), lambda p, t: (t, 0)),   # pred
            pl.BlockSpec((tile_rows, _LANE), lambda p, t: (t, 0)),   # target
            pl.BlockSpec((tile_rows, _LANE), lambda p, t: (t, 0)),   # label_weight
            pl.BlockSpec(memory_space=pltpu.MemorySpace.SMEM),       # acc_sum (resident)
        ],
        out_specs=(
            pl.BlockSpec(memory_space=pltpu.MemorySpace.SMEM),       # loss
            pl.BlockSpec(memory_space=pltpu.MemorySpace.SMEM),       # new acc_sum
        ),
        scratch_shapes=[
            pltpu.SMEM((BINS,), jnp.float32),   # global per-bin counts
            pltpu.SMEM((BINS,), jnp.float32),   # per-bin loss coefficients
        ],
        compiler_params=pltpu.CompilerParams(
            dimension_semantics=("arbitrary", "arbitrary"),  # carried SMEM accumulators
            vmem_limit_bytes=32 * 1024 * 1024,               # safe on v5e/v6e/v7x; usage ~3 MiB
        ),
    )(pred2, target2, lw2, acc_sum)
    return loss[0], new_acc


# ----------------------------------------------------------------------------
# Pure-numpy reference mirroring the PyTorch forward exactly (for verification)
# ----------------------------------------------------------------------------
def ghmc_ref(pred, target, lw, acc_sum):
    pred = np.asarray(pred, np.float32)
    target = np.asarray(target, np.float32)
    lw = np.asarray(lw, np.float32)
    acc_sum = np.asarray(acc_sum, np.float32).copy()

    edges = np.array(_EDGES, np.float32)
    g = np.abs(1.0 / (1.0 + np.exp(-pred)) - target)
    valid = lw > 0
    tot = max(float(valid.sum()), 1.0)
    weights = np.zeros_like(pred)
    n = 0
    for i in range(BINS):
        inds = (g >= edges[i]) & (g < edges[i + 1]) & valid
        num_in_bin = float(inds.sum())
        if num_in_bin > 0:
            acc_sum[i] = MOMENTUM * acc_sum[i] + (1 - MOMENTUM) * num_in_bin
            weights[inds] = 2 * tot / acc_sum[i]
            n += 1
    if n > 0:
        weights = weights / n
    bce = np.maximum(pred, 0) - pred * target + np.log1p(np.exp(-np.abs(pred)))
    loss = (weights * bce).sum() / tot
    return np.float32(loss * LOSS_WEIGHT), acc_sum


if __name__ == "__main__":
    N, C = 16, 32  # [batch_num, class_num]
    key = jax.random.PRNGKey(0)
    k1, k2, k3 = jax.random.split(key, 3)

    pred = jax.random.normal(k1, (N, C), dtype=jnp.float32) * 2.0
    target = (jax.random.uniform(k2, (N, C)) > 0.7).astype(jnp.float32)
    label_weight = (jax.random.uniform(k3, (N, C)) > 0.1).astype(jnp.float32)
    acc0 = jnp.zeros((BINS,), dtype=jnp.float32)  # module state, zero-init

    # first call (zero momentum state)
    loss1, acc1 = ghmc_loss(pred, target, label_weight, acc0)
    loss1 = jax.block_until_ready(loss1)
    acc1 = jax.block_until_ready(acc1)
    ref_loss1, ref_acc1 = ghmc_ref(pred, target, label_weight, acc0)
    assert np.allclose(np.asarray(loss1), ref_loss1, rtol=1e-4, atol=1e-5), \
        f"loss mismatch: {loss1} vs {ref_loss1}"
    assert np.allclose(np.asarray(acc1), ref_acc1, rtol=1e-4, atol=1e-5), \
        f"acc_sum mismatch: {acc1} vs {ref_acc1}"

    # second call exercises the nonzero momentum-state path
    loss2, acc2 = ghmc_loss(pred, target, label_weight, acc1)
    loss2 = jax.block_until_ready(loss2)
    acc2 = jax.block_until_ready(acc2)
    ref_loss2, ref_acc2 = ghmc_ref(pred, target, label_weight, np.asarray(acc1))
    assert np.allclose(np.asarray(loss2), ref_loss2, rtol=1e-4, atol=1e-5), \
        f"loss mismatch (call 2): {loss2} vs {ref_loss2}"
    assert np.allclose(np.asarray(acc2), ref_acc2, rtol=1e-4, atol=1e-5), \
        f"acc_sum mismatch (call 2): {acc2} vs {ref_acc2}"

    print("KERNEL_OK")
</pallas_src>

<mosaic_0001>
module attributes {stable_mosaic.version = 11 : i64} {
  func.func @_ghmc_kernel(%arg0: i32, %arg1: i32, %arg2: memref<16x128xf32, #tpu.memory_space<vmem>>, %arg3: memref<16x128xf32, #tpu.memory_space<vmem>>, %arg4: memref<16x128xf32, #tpu.memory_space<vmem>>, %arg5: memref<10xf32, #tpu.memory_space<smem>>, %arg6: memref<1xf32, #tpu.memory_space<smem>>, %arg7: memref<10xf32, #tpu.memory_space<smem>>, %arg8: memref<10xf32, #tpu.memory_space<smem>>, %arg9: memref<10xf32, #tpu.memory_space<smem>>) attributes {dimension_semantics = [#tpu.dimension_semantics<arbitrary>, #tpu.dimension_semantics<arbitrary>], iteration_bounds = array<i64: 2, 1>, scalar_prefetch = 0 : i64, scratch_operands = 2 : i64, tpu.core_type = #tpu.core_type<tc>, window_params = [{transform_indices = @transform_0, window_bounds = array<i64: 16, 128>}, {transform_indices = @transform_1, window_bounds = array<i64: 16, 128>}, {transform_indices = @transform_2, window_bounds = array<i64: 16, 128>}, {transform_indices = @transform_3, window_bounds = array<i64: 10>}, {transform_indices = @transform_4, window_bounds = array<i64: 1>}, {transform_indices = @transform_5, window_bounds = array<i64: 10>}]} {
    %c0 = arith.constant 0 : index
    %c0_0 = arith.constant 0 : index
    %0 = vector.load %arg2[%c0, %c0_0] : memref<16x128xf32, #tpu.memory_space<vmem>>, vector<16x128xf32>
    %c0_1 = arith.constant 0 : index
    %c0_2 = arith.constant 0 : index
    %1 = vector.load %arg3[%c0_1, %c0_2] : memref<16x128xf32, #tpu.memory_space<vmem>>, vector<16x128xf32>
    %c0_3 = arith.constant 0 : index
    %c0_4 = arith.constant 0 : index
    %2 = vector.load %arg4[%c0_3, %c0_4] : memref<16x128xf32, #tpu.memory_space<vmem>>, vector<16x128xf32>
    %3 = arith.negf %0 : vector<16x128xf32>
    %4 = math.exp %3 : vector<16x128xf32>
    %cst = arith.constant 1.000000e+00 : f32
    %5 = vector.broadcast %cst : f32 to vector<16x128xf32>
    %6 = arith.addf %5, %4 : vector<16x128xf32>
    %7 = arith.divf %5, %6 : vector<16x128xf32>
    %8 = arith.subf %7, %1 : vector<16x128xf32>
    %9 = math.absf %8 : vector<16x128xf32>
    %cst_5 = arith.constant 0.000000e+00 : f32
    %10 = vector.broadcast %cst_5 : f32 to vector<16x128xf32>
    %11 = arith.cmpf ogt, %2, %10 : vector<16x128xf32>
    %cst_6 = arith.constant 1.000000e+01 : f32
    %12 = vector.broadcast %cst_6 : f32 to vector<16x128xf32>
    %13 = arith.mulf %9, %12 : vector<16x128xf32>
    %14 = math.floor %13 : vector<16x128xf32>
    %cst_7 = arith.constant 0.000000e+00 : f32
    %cst_8 = arith.constant 9.000000e+00 : f32
    %15 = vector.broadcast %cst_7 : f32 to vector<16x128xf32>
    %16 = arith.maximumf %15, %14 : vector<16x128xf32>
    %17 = vector.broadcast %cst_8 : f32 to vector<16x128xf32>
    %18 = arith.minimumf %17, %16 : vector<16x128xf32>
    %cst_9 = arith.constant -1.000000e+00 : f32
    %19 = vector.broadcast %cst_9 : f32 to vector<16x128xf32>
    %20 = arith.select %11, %18, %19 : vector<16x128xi1>, vector<16x128xf32>
    %c0_i32 = arith.constant 0 : i32
    %21 = arith.cmpi eq, %arg0, %c0_i32 : i32
    %c0_i32_10 = arith.constant 0 : i32
    %22 = arith.cmpi eq, %arg1, %c0_i32_10 : i32
    %23 = arith.andi %21, %22 : i1
    %24 = arith.extui %23 : i1 to i32
    %c0_i32_11 = arith.constant 0 : i32
    %25 = arith.cmpi ne, %24, %c0_i32_11 : i32
    scf.if %25 {
      %cst_21 = arith.constant 0.000000e+00 : f32
      %c0_22 = arith.constant 0 : index
      %42 = memref.load %arg8[%c0_22] : memref<10xf32, #tpu.memory_space<smem>>
      memref.store %cst_21, %arg8[%c0_22] : memref<10xf32, #tpu.memory_space<smem>>
      %cst_23 = arith.constant 0.000000e+00 : f32
      %c1 = arith.constant 1 : index
      %43 = memref.load %arg8[%c1] : memref<10xf32, #tpu.memory_space<smem>>
      memref.store %cst_23, %arg8[%c1] : memref<10xf32, #tpu.memory_space<smem>>
      %cst_24 = arith.constant 0.000000e+00 : f32
      %c2 = arith.constant 2 : index
      %44 = memref.load %arg8[%c2] : memref<10xf32, #tpu.memory_space<smem>>
      memref.store %cst_24, %arg8[%c2] : memref<10xf32, #tpu.memory_space<smem>>
      %cst_25 = arith.constant 0.000000e+00 : f32
      %c3 = arith.constant 3 : index
      %45 = memref.load %arg8[%c3] : memref<10xf32, #tpu.memory_space<smem>>
      memref.store %cst_25, %arg8[%c3] : memref<10xf32, #tpu.memory_space<smem>>
      %cst_26 = arith.constant 0.000000e+00 : f32
      %c4 = arith.constant 4 : index
      %46 = memref.load %arg8[%c4] : memref<10xf32, #tpu.memory_space<smem>>
      memref.store %cst_26, %arg8[%c4] : memref<10xf32, #tpu.memory_space<smem>>
      %cst_27 = arith.constant 0.000000e+00 : f32
      %c5 = arith.constant 5 : index
      %47 = memref.load %arg8[%c5] : memref<10xf32, #tpu.memory_space<smem>>
      memref.store %cst_27, %arg8[%c5] : memref<10xf32, #tpu.memory_space<smem>>
      %cst_28 = arith.constant 0.000000e+00 : f32
      %c6 = arith.constant 6 : index
      %48 = memref.load %arg8[%c6] : memref<10xf32, #tpu.memory_space<smem>>
      memref.store %cst_28, %arg8[%c6] : memref<10xf32, #tpu.memory_space<smem>>
      %cst_29 = arith.constant 0.000000e+00 : f32
      %c7 = arith.constant 7 : index
      %49 = memref.load %arg8[%c7] : memref<10xf32, #tpu.memory_space<smem>>
      memref.store %cst_29, %arg8[%c7] : memref<10xf32, #tpu.memory_space<smem>>
      %cst_30 = arith.constant 0.000000e+00 : f32
      %c8 = arith.constant 8 : index
      %50 = memref.load %arg8[%c8] : memref<10xf32, #tpu.memory_space<smem>>
      memref.store %cst_30, %arg8[%c8] : memref<10xf32, #tpu.memory_space<smem>>
      %cst_31 = arith.constant 0.000000e+00 : f32
      %c9 = arith.constant 9 : index
      %51 = memref.load %arg8[%c9] : memref<10xf32, #tpu.memory_space<smem>>
      memref.store %cst_31, %arg8[%c9] : memref<10xf32, #tpu.memory_space<smem>>
    } else {
    }
    %c0_i32_12 = arith.constant 0 : i32
    %26 = arith.cmpi eq, %arg0, %c0_i32_12 : i32
    %27 = arith.extui %26 : i1 to i32
    %c0_i32_13 = arith.constant 0 : i32
    %28 = arith.cmpi ne, %27, %c0_i32_13 : i32
    scf.if %28 {
      %c0_21 = arith.constant 0 : index
      %42 = memref.load %arg8[%c0_21] : memref<10xf32, #tpu.memory_space<smem>>
      %cst_22 = arith.constant 0.000000e+00 : f32
      %43 = vector.broadcast %cst_22 : f32 to vector<16x128xf32>
      %44 = arith.cmpf oeq, %20, %43 : vector<16x128xf32>
      %45 = arith.extui %44 : vector<16x128xi1> to vector<16x128xi32>
      %46 = arith.sitofp %45 : vector<16x128xi32> to vector<16x128xf32>
      %47 = vector.shape_cast %46 : vector<16x128xf32> to vector<1x16x128xf32>
      %cst_23 = arith.constant dense<0.000000e+00> : vector<1xf32>
      %48 = vector.multi_reduction <add>, %47, %cst_23 [1, 2] : vector<1x16x128xf32> to vector<1xf32>
      %49 = vector.shape_cast %48 : vector<1xf32> to vector<1x1x1xf32>
      %50 = vector.extract %49[0, 0, 0] : f32 from vector<1x1x1xf32>
      %51 = arith.addf %42, %50 : f32
      %c0_24 = arith.constant 0 : index
      %52 = memref.load %arg8[%c0_24] : memref<10xf32, #tpu.memory_space<smem>>
      memref.store %51, %arg8[%c0_24] : memref<10xf32, #tpu.memory_space<smem>>
      %c1 = arith.constant 1 : index
      %53 = memref.load %arg8[%c1] : memref<10xf32, #tpu.memory_space<smem>>
      %cst_25 = arith.constant 1.000000e+00 : f32
      %54 = vector.broadcast %cst_25 : f32 to vector<16x128xf32>
      %55 = arith.cmpf oeq, %20, %54 : vector<16x128xf32>
      %56 = arith.extui %55 : vector<16x128xi1> to vector<16x128xi32>
      %57 = arith.sitofp %56 : vector<16x128xi32> to vector<16x128xf32>
      %58 = vector.shape_cast %57 : vector<16x128xf32> to vector<1x16x128xf32>
      %cst_26 = arith.constant dense<0.000000e+00> : vector<1xf32>
      %59 = vector.multi_reduction <add>, %58, %cst_26 [1, 2] : vector<1x16x128xf32> to vector<1xf32>
      %60 = vector.shape_cast %59 : vector<1xf32> to vector<1x1x1xf32>
      %61 = vector.extract %60[0, 0, 0] : f32 from vector<1x1x1xf32>
      %62 = arith.addf %53, %61 : f32
      %c1_27 = arith.constant 1 : index
      %63 = memref.load %arg8[%c1_27] : memref<10xf32, #tpu.memory_space<smem>>
      memref.store %62, %arg8[%c1_27] : memref<10xf32, #tpu.memory_space<smem>>
      %c2 = arith.constant 2 : index
      %64 = memref.load %arg8[%c2] : memref<10xf32, #tpu.memory_space<smem>>
      %cst_28 = arith.constant 2.000000e+00 : f32
      %65 = vector.broadcast %cst_28 : f32 to vector<16x128xf32>
      %66 = arith.cmpf oeq, %20, %65 : vector<16x128xf32>
      %67 = arith.extui %66 : vector<16x128xi1> to vector<16x128xi32>
      %68 = arith.sitofp %67 : vector<16x128xi32> to vector<16x128xf32>
      %69 = vector.shape_cast %68 : vector<16x128xf32> to vector<1x16x128xf32>
      %cst_29 = arith.constant dense<0.000000e+00> : vector<1xf32>
      %70 = vector.multi_reduction <add>, %69, %cst_29 [1, 2] : vector<1x16x128xf32> to vector<1xf32>
      %71 = vector.shape_cast %70 : vector<1xf32> to vector<1x1x1xf32>
      %72 = vector.extract %71[0, 0, 0] : f32 from vector<1x1x1xf32>
      %73 = arith.addf %64, %72 : f32
      %c2_30 = arith.constant 2 : index
      %74 = memref.load %arg8[%c2_30] : memref<10xf32, #tpu.memory_space<smem>>
      memref.store %73, %arg8[%c2_30] : memref<10xf32, #tpu.memory_space<smem>>
      %c3 = arith.constant 3 : index
      %75 = memref.load %arg8[%c3] : memref<10xf32, #tpu.memory_space<smem>>
      %cst_31 = arith.constant 3.000000e+00 : f32
      %76 = vector.broadcast %cst_31 : f32 to vector<16x128xf32>
      %77 = arith.cmpf oeq, %20, %76 : vector<16x128xf32>
      %78 = arith.extui %77 : vector<16x128xi1> to vector<16x128xi32>
      %79 = arith.sitofp %78 : vector<16x128xi32> to vector<16x128xf32>
      %80 = vector.shape_cast %79 : vector<16x128xf32> to vector<1x16x128xf32>
      %cst_32 = arith.constant dense<0.000000e+00> : vector<1xf32>
      %81 = vector.multi_reduction <add>, %80, %cst_32 [1, 2] : vector<1x16x128xf32> to vector<1xf32>
      %82 = vector.shape_cast %81 : vector<1xf32> to vector<1x1x1xf32>
      %83 = vector.extract %82[0, 0, 0] : f32 from vector<1x1x1xf32>
      %84 = arith.addf %75, %83 : f32
      %c3_33 = arith.constant 3 : index
      %85 = memref.load %arg8[%c3_33] : memref<10xf32, #tpu.memory_space<smem>>
      memref.store %84, %arg8[%c3_33] : memref<10xf32, #tpu.memory_space<smem>>
      %c4 = arith.constant 4 : index
      %86 = memref.load %arg8[%c4] : memref<10xf32, #tpu.memory_space<smem>>
      %cst_34 = arith.constant 4.000000e+00 : f32
      %87 = vector.broadcast %cst_34 : f32 to vector<16x128xf32>
      %88 = arith.cmpf oeq, %20, %87 : vector<16x128xf32>
      %89 = arith.extui %88 : vector<16x128xi1> to vector<16x128xi32>
      %90 = arith.sitofp %89 : vector<16x128xi32> to vector<16x128xf32>
      %91 = vector.shape_cast %90 : vector<16x128xf32> to vector<1x16x128xf32>
      %cst_35 = arith.constant dense<0.000000e+00> : vector<1xf32>
      %92 = vector.multi_reduction <add>, %91, %cst_35 [1, 2] : vector<1x16x128xf32> to vector<1xf32>
      %93 = vector.shape_cast %92 : vector<1xf32> to vector<1x1x1xf32>
      %94 = vector.extract %93[0, 0, 0] : f32 from vector<1x1x1xf32>
      %95 = arith.addf %86, %94 : f32
      %c4_36 = arith.constant 4 : index
      %96 = memref.load %arg8[%c4_36] : memref<10xf32, #tpu.memory_space<smem>>
      memref.store %95, %arg8[%c4_36] : memref<10xf32, #tpu.memory_space<smem>>
      %c5 = arith.constant 5 : index
      %97 = memref.load %arg8[%c5] : memref<10xf32, #tpu.memory_space<smem>>
      %cst_37 = arith.constant 5.000000e+00 : f32
      %98 = vector.broadcast %cst_37 : f32 to vector<16x128xf32>
      %99 = arith.cmpf oeq, %20, %98 : vector<16x128xf32>
      %100 = arith.extui %99 : vector<16x128xi1> to vector<16x128xi32>
      %101 = arith.sitofp %100 : vector<16x128xi32> to vector<16x128xf32>
      %102 = vector.shape_cast %101 : vector<16x128xf32> to vector<1x16x128xf32>
      %cst_38 = arith.constant dense<0.000000e+00> : vector<1xf32>
      %103 = vector.multi_reduction <add>, %102, %cst_38 [1, 2] : vector<1x16x128xf32> to vector<1xf32>
      %104 = vector.shape_cast %103 : vector<1xf32> to vector<1x1x1xf32>
      %105 = vector.extract %104[0, 0, 0] : f32 from vector<1x1x1xf32>
      %106 = arith.addf %97, %105 : f32
      %c5_39 = arith.constant 5 : index
      %107 = memref.load %arg8[%c5_39] : memref<10xf32, #tpu.memory_space<smem>>
      memref.store %106, %arg8[%c5_39] : memref<10xf32, #tpu.memory_space<smem>>
      %c6 = arith.constant 6 : index
      %108 = memref.load %arg8[%c6] : memref<10xf32, #tpu.memory_space<smem>>
      %cst_40 = arith.constant 6.000000e+00 : f32
      %109 = vector.broadcast %cst_40 : f32 to vector<16x128xf32>
      %110 = arith.cmpf oeq, %20, %109 : vector<16x128xf32>
      %111 = arith.extui %110 : vector<16x128xi1> to vector<16x128xi32>
      %112 = arith.sitofp %111 : vector<16x128xi32> to vector<16x128xf32>
      %113 = vector.shape_cast %112 : vector<16x128xf32> to vector<1x16x128xf32>
      %cst_41 = arith.constant dense<0.000000e+00> : vector<1xf32>
      %114 = vector.multi_reduction <add>, %113, %cst_41 [1, 2] : vector<1x16x128xf32> to vector<1xf32>
      %115 = vector.shape_cast %114 : vector<1xf32> to vector<1x1x1xf32>
      %116 = vector.extract %115[0, 0, 0] : f32 from vector<1x1x1xf32>
      %117 = arith.addf %108, %116 : f32
      %c6_42 = arith.constant 6 : index
      %118 = memref.load %arg8[%c6_42] : memref<10xf32, #tpu.memory_space<smem>>
      memref.store %117, %arg8[%c6_42] : memref<10xf32, #tpu.memory_space<smem>>
      %c7 = arith.constant 7 : index
      %119 = memref.load %arg8[%c7] : memref<10xf32, #tpu.memory_space<smem>>
      %cst_43 = arith.constant 7.000000e+00 : f32
      %120 = vector.broadcast %cst_43 : f32 to vector<16x128xf32>
      %121 = arith.cmpf oeq, %20, %120 : vector<16x128xf32>
      %122 = arith.extui %121 : vector<16x128xi1> to vector<16x128xi32>
      %123 = arith.sitofp %122 : vector<16x128xi32> to vector<16x128xf32>
      %124 = vector.shape_cast %123 : vector<16x128xf32> to vector<1x16x128xf32>
      %cst_44 = arith.constant dense<0.000000e+00> : vector<1xf32>
      %125 = vector.multi_reduction <add>, %124, %cst_44 [1, 2] : vector<1x16x128xf32> to vector<1xf32>
      %126 = vector.shape_cast %125 : vector<1xf32> to vector<1x1x1xf32>
      %127 = vector.extract %126[0, 0, 0] : f32 from vector<1x1x1xf32>
      %128 = arith.addf %119, %127 : f32
      %c7_45 = arith.constant 7 : index
      %129 = memref.load %arg8[%c7_45] : memref<10xf32, #tpu.memory_space<smem>>
      memref.store %128, %arg8[%c7_45] : memref<10xf32, #tpu.memory_space<smem>>
      %c8 = arith.constant 8 : index
      %130 = memref.load %arg8[%c8] : memref<10xf32, #tpu.memory_space<smem>>
      %cst_46 = arith.constant 8.000000e+00 : f32
      %131 = vector.broadcast %cst_46 : f32 to vector<16x128xf32>
      %132 = arith.cmpf oeq, %20, %131 : vector<16x128xf32>
      %133 = arith.extui %132 : vector<16x128xi1> to vector<16x128xi32>
      %134 = arith.sitofp %133 : vector<16x128xi32> to vector<16x128xf32>
      %135 = vector.shape_cast %134 : vector<16x128xf32> to vector<1x16x128xf32>
      %cst_47 = arith.constant dense<0.000000e+00> : vector<1xf32>
      %136 = vector.multi_reduction <add>, %135, %cst_47 [1, 2] : vector<1x16x128xf32> to vector<1xf32>
      %137 = vector.shape_cast %136 : vector<1xf32> to vector<1x1x1xf32>
      %138 = vector.extract %137[0, 0, 0] : f32 from vector<1x1x1xf32>
      %139 = arith.addf %130, %138 : f32
      %c8_48 = arith.constant 8 : index
      %140 = memref.load %arg8[%c8_48] : memref<10xf32, #tpu.memory_space<smem>>
      memref.store %139, %arg8[%c8_48] : memref<10xf32, #tpu.memory_space<smem>>
      %c9 = arith.constant 9 : index
      %141 = memref.load %arg8[%c9] : memref<10xf32, #tpu.memory_space<smem>>
      %cst_49 = arith.constant 9.000000e+00 : f32
      %142 = vector.broadcast %cst_49 : f32 to vector<16x128xf32>
      %143 = arith.cmpf oeq, %20, %142 : vector<16x128xf32>
      %144 = arith.extui %143 : vector<16x128xi1> to vector<16x128xi32>
      %145 = arith.sitofp %144 : vector<16x128xi32> to vector<16x128xf32>
      %146 = vector.shape_cast %145 : vector<16x128xf32> to vector<1x16x128xf32>
      %cst_50 = arith.constant dense<0.000000e+00> : vector<1xf32>
      %147 = vector.multi_reduction <add>, %146, %cst_50 [1, 2] : vector<1x16x128xf32> to vector<1xf32>
      %148 = vector.shape_cast %147 : vector<1xf32> to vector<1x1x1xf32>
      %149 = vector.extract %148[0, 0, 0] : f32 from vector<1x1x1xf32>
      %150 = arith.addf %141, %149 : f32
      %c9_51 = arith.constant 9 : index
      %151 = memref.load %arg8[%c9_51] : memref<10xf32, #tpu.memory_space<smem>>
      memref.store %150, %arg8[%c9_51] : memref<10xf32, #tpu.memory_space<smem>>
    } else {
    }
    %c1_i32 = arith.constant 1 : i32
    %29 = arith.cmpi eq, %arg0, %c1_i32 : i32
    %c0_i32_14 = arith.constant 0 : i32
    %30 = arith.cmpi eq, %arg1, %c0_i32_14 : i32
    %31 = arith.andi %29, %30 : i1
    %32 = arith.extui %31 : i1 to i32
    %c0_i32_15 = arith.constant 0 : i32
    %33 = arith.cmpi ne, %32, %c0_i32_15 : i32
    scf.if %33 {
      %c0_21 = arith.constant 0 : index
      %42 = memref.load %arg8[%c0_21] : memref<10xf32, #tpu.memory_space<smem>>
      %cst_22 = arith.constant 0.000000e+00 : f32
      %43 = arith.cmpf ogt, %42, %cst_22 : f32
      %c0_23 = arith.constant 0 : index
      %44 = memref.load %arg5[%c0_23] : memref<10xf32, #tpu.memory_space<smem>>
      %cst_24 = arith.constant 2.000000e-02 : f32
      %45 = arith.mulf %cst_24, %44 : f32
      %cst_25 = arith.constant 9.800000e-01 : f32
      %46 = arith.mulf %cst_25, %42 : f32
      %47 = arith.addf %45, %46 : f32
      %c0_26 = arith.constant 0 : index
      %48 = memref.load %arg5[%c0_26] : memref<10xf32, #tpu.memory_space<smem>>
      %49 = arith.select %43, %47, %48 : f32
      %c0_27 = arith.constant 0 : index
      %50 = memref.load %arg7[%c0_27] : memref<10xf32, #tpu.memory_space<smem>>
      memref.store %49, %arg7[%c0_27] : memref<10xf32, #tpu.memory_space<smem>>
      %cst_28 = arith.constant 1.000000e+00 : f32
      %cst_29 = arith.constant 0.000000e+00 : f32
      %51 = arith.select %43, %cst_28, %cst_29 : f32
      %cst_30 = arith.constant 0.000000e+00 : f32
      %52 = arith.addf %cst_30, %51 : f32
      %c1 = arith.constant 1 : index
      %53 = memref.load %arg8[%c1] : memref<10xf32, #tpu.memory_space<smem>>
      %cst_31 = arith.constant 0.000000e+00 : f32
      %54 = arith.cmpf ogt, %53, %cst_31 : f32
      %c1_32 = arith.constant 1 : index
      %55 = memref.load %arg5[%c1_32] : memref<10xf32, #tpu.memory_space<smem>>
      %cst_33 = arith.constant 2.000000e-02 : f32
      %56 = arith.mulf %cst_33, %55 : f32
      %cst_34 = arith.constant 9.800000e-01 : f32
      %57 = arith.mulf %cst_34, %53 : f32
      %58 = arith.addf %56, %57 : f32
      %c1_35 = arith.constant 1 : index
      %59 = memref.load %arg5[%c1_35] : memref<10xf32, #tpu.memory_space<smem>>
      %60 = arith.select %54, %58, %59 : f32
      %c1_36 = arith.constant 1 : index
      %61 = memref.load %arg7[%c1_36] : memref<10xf32, #tpu.memory_space<smem>>
      memref.store %60, %arg7[%c1_36] : memref<10xf32, #tpu.memory_space<smem>>
      %cst_37 = arith.constant 1.000000e+00 : f32
      %cst_38 = arith.constant 0.000000e+00 : f32
      %62 = arith.select %54, %cst_37, %cst_38 : f32
      %63 = arith.addf %52, %62 : f32
      %c2 = arith.constant 2 : index
      %64 = memref.load %arg8[%c2] : memref<10xf32, #tpu.memory_space<smem>>
      %cst_39 = arith.constant 0.000000e+00 : f32
      %65 = arith.cmpf ogt, %64, %cst_39 : f32
      %c2_40 = arith.constant 2 : index
      %66 = memref.load %arg5[%c2_40] : memref<10xf32, #tpu.memory_space<smem>>
      %cst_41 = arith.constant 2.000000e-02 : f32
      %67 = arith.mulf %cst_41, %66 : f32
      %cst_42 = arith.constant 9.800000e-01 : f32
      %68 = arith.mulf %cst_42, %64 : f32
      %69 = arith.addf %67, %68 : f32
      %c2_43 = arith.constant 2 : index
      %70 = memref.load %arg5[%c2_43] : memref<10xf32, #tpu.memory_space<smem>>
      %71 = arith.select %65, %69, %70 : f32
      %c2_44 = arith.constant 2 : index
      %72 = memref.load %arg7[%c2_44] : memref<10xf32, #tpu.memory_space<smem>>
      memref.store %71, %arg7[%c2_44] : memref<10xf32, #tpu.memory_space<smem>>
      %cst_45 = arith.constant 1.000000e+00 : f32
      %cst_46 = arith.constant 0.000000e+00 : f32
      %73 = arith.select %65, %cst_45, %cst_46 : f32
      %74 = arith.addf %63, %73 : f32
      %c3 = arith.constant 3 : index
      %75 = memref.load %arg8[%c3] : memref<10xf32, #tpu.memory_space<smem>>
      %cst_47 = arith.constant 0.000000e+00 : f32
      %76 = arith.cmpf ogt, %75, %cst_47 : f32
      %c3_48 = arith.constant 3 : index
      %77 = memref.load %arg5[%c3_48] : memref<10xf32, #tpu.memory_space<smem>>
      %cst_49 = arith.constant 2.000000e-02 : f32
      %78 = arith.mulf %cst_49, %77 : f32
      %cst_50 = arith.constant 9.800000e-01 : f32
      %79 = arith.mulf %cst_50, %75 : f32
      %80 = arith.addf %78, %79 : f32
      %c3_51 = arith.constant 3 : index
      %81 = memref.load %arg5[%c3_51] : memref<10xf32, #tpu.memory_space<smem>>
      %82 = arith.select %76, %80, %81 : f32
      %c3_52 = arith.constant 3 : index
      %83 = memref.load %arg7[%c3_52] : memref<10xf32, #tpu.memory_space<smem>>
      memref.store %82, %arg7[%c3_52] : memref<10xf32, #tpu.memory_space<smem>>
      %cst_53 = arith.constant 1.000000e+00 : f32
      %cst_54 = arith.constant 0.000000e+00 : f32
      %84 = arith.select %76, %cst_53, %cst_54 : f32
      %85 = arith.addf %74, %84 : f32
      %c4 = arith.constant 4 : index
      %86 = memref.load %arg8[%c4] : memref<10xf32, #tpu.memory_space<smem>>
      %cst_55 = arith.constant 0.000000e+00 : f32
      %87 = arith.cmpf ogt, %86, %cst_55 : f32
      %c4_56 = arith.constant 4 : index
      %88 = memref.load %arg5[%c4_56] : memref<10xf32, #tpu.memory_space<smem>>
      %cst_57 = arith.constant 2.000000e-02 : f32
      %89 = arith.mulf %cst_57, %88 : f32
      %cst_58 = arith.constant 9.800000e-01 : f32
      %90 = arith.mulf %cst_58, %86 : f32
      %91 = arith.addf %89, %90 : f32
      %c4_59 = arith.constant 4 : index
      %92 = memref.load %arg5[%c4_59] : memref<10xf32, #tpu.memory_space<smem>>
      %93 = arith.select %87, %91, %92 : f32
      %c4_60 = arith.constant 4 : index
      %94 = memref.load %arg7[%c4_60] : memref<10xf32, #tpu.memory_space<smem>>
      memref.store %93, %arg7[%c4_60] : memref<10xf32, #tpu.memory_space<smem>>
      %cst_61 = arith.constant 1.000000e+00 : f32
      %cst_62 = arith.constant 0.000000e+00 : f32
      %95 = arith.select %87, %cst_61, %cst_62 : f32
      %96 = arith.addf %85, %95 : f32
      %c5 = arith.constant 5 : index
      %97 = memref.load %arg8[%c5] : memref<10xf32, #tpu.memory_space<smem>>
      %cst_63 = arith.constant 0.000000e+00 : f32
      %98 = arith.cmpf ogt, %97, %cst_63 : f32
      %c5_64 = arith.constant 5 : index
      %99 = memref.load %arg5[%c5_64] : memref<10xf32, #tpu.memory_space<smem>>
      %cst_65 = arith.constant 2.000000e-02 : f32
      %100 = arith.mulf %cst_65, %99 : f32
      %cst_66 = arith.constant 9.800000e-01 : f32
      %101 = arith.mulf %cst_66, %97 : f32
      %102 = arith.addf %100, %101 : f32
      %c5_67 = arith.constant 5 : index
      %103 = memref.load %arg5[%c5_67] : memref<10xf32, #tpu.memory_space<smem>>
      %104 = arith.select %98, %102, %103 : f32
      %c5_68 = arith.constant 5 : index
      %105 = memref.load %arg7[%c5_68] : memref<10xf32, #tpu.memory_space<smem>>
      memref.store %104, %arg7[%c5_68] : memref<10xf32, #tpu.memory_space<smem>>
      %cst_69 = arith.constant 1.000000e+00 : f32
      %cst_70 = arith.constant 0.000000e+00 : f32
      %106 = arith.select %98, %cst_69, %cst_70 : f32
      %107 = arith.addf %96, %106 : f32
      %c6 = arith.constant 6 : index
      %108 = memref.load %arg8[%c6] : memref<10xf32, #tpu.memory_space<smem>>
      %cst_71 = arith.constant 0.000000e+00 : f32
      %109 = arith.cmpf ogt, %108, %cst_71 : f32
      %c6_72 = arith.constant 6 : index
      %110 = memref.load %arg5[%c6_72] : memref<10xf32, #tpu.memory_space<smem>>
      %cst_73 = arith.constant 2.000000e-02 : f32
      %111 = arith.mulf %cst_73, %110 : f32
      %cst_74 = arith.constant 9.800000e-01 : f32
      %112 = arith.mulf %cst_74, %108 : f32
      %113 = arith.addf %111, %112 : f32
      %c6_75 = arith.constant 6 : index
      %114 = memref.load %arg5[%c6_75] : memref<10xf32, #tpu.memory_space<smem>>
      %115 = arith.select %109, %113, %114 : f32
      %c6_76 = arith.constant 6 : index
      %116 = memref.load %arg7[%c6_76] : memref<10xf32, #tpu.memory_space<smem>>
      memref.store %115, %arg7[%c6_76] : memref<10xf32, #tpu.memory_space<smem>>
      %cst_77 = arith.constant 1.000000e+00 : f32
      %cst_78 = arith.constant 0.000000e+00 : f32
      %117 = arith.select %109, %cst_77, %cst_78 : f32
      %118 = arith.addf %107, %117 : f32
      %c7 = arith.constant 7 : index
      %119 = memref.load %arg8[%c7] : memref<10xf32, #tpu.memory_space<smem>>
      %cst_79 = arith.constant 0.000000e+00 : f32
      %120 = arith.cmpf ogt, %119, %cst_79 : f32
      %c7_80 = arith.constant 7 : index
      %121 = memref.load %arg5[%c7_80] : memref<10xf32, #tpu.memory_space<smem>>
      %cst_81 = arith.constant 2.000000e-02 : f32
      %122 = arith.mulf %cst_81, %121 : f32
      %cst_82 = arith.constant 9.800000e-01 : f32
      %123 = arith.mulf %cst_82, %119 : f32
      %124 = arith.addf %122, %123 : f32
      %c7_83 = arith.constant 7 : index
      %125 = memref.load %arg5[%c7_83] : memref<10xf32, #tpu.memory_space<smem>>
      %126 = arith.select %120, %124, %125 : f32
      %c7_84 = arith.constant 7 : index
      %127 = memref.load %arg7[%c7_84] : memref<10xf32, #tpu.memory_space<smem>>
      memref.store %126, %arg7[%c7_84] : memref<10xf32, #tpu.memory_space<smem>>
      %cst_85 = arith.constant 1.000000e+00 : f32
      %cst_86 = arith.constant 0.000000e+00 : f32
      %128 = arith.select %120, %cst_85, %cst_86 : f32
      %129 = arith.addf %118, %128 : f32
      %c8 = arith.constant 8 : index
      %130 = memref.load %arg8[%c8] : memref<10xf32, #tpu.memory_space<smem>>
      %cst_87 = arith.constant 0.000000e+00 : f32
      %131 = arith.cmpf ogt, %130, %cst_87 : f32
      %c8_88 = arith.constant 8 : index
      %132 = memref.load %arg5[%c8_88] : memref<10xf32, #tpu.memory_space<smem>>
      %cst_89 = arith.constant 2.000000e-02 : f32
      %133 = arith.mulf %cst_89, %132 : f32
      %cst_90 = arith.constant 9.800000e-01 : f32
      %134 = arith.mulf %cst_90, %130 : f32
      %135 = arith.addf %133, %134 : f32
      %c8_91 = arith.constant 8 : index
      %136 = memref.load %arg5[%c8_91] : memref<10xf32, #tpu.memory_space<smem>>
      %137 = arith.select %131, %135, %136 : f32
      %c8_92 = arith.constant 8 : index
      %138 = memref.load %arg7[%c8_92] : memref<10xf32, #tpu.memory_space<smem>>
      memref.store %137, %arg7[%c8_92] : memref<10xf32, #tpu.memory_space<smem>>
      %cst_93 = arith.constant 1.000000e+00 : f32
      %cst_94 = arith.constant 0.000000e+00 : f32
      %139 = arith.select %131, %cst_93, %cst_94 : f32
      %140 = arith.addf %129, %139 : f32
      %c9 = arith.constant 9 : index
      %141 = memref.load %arg8[%c9] : memref<10xf32, #tpu.memory_space<smem>>
      %cst_95 = arith.constant 0.000000e+00 : f32
      %142 = arith.cmpf ogt, %141, %cst_95 : f32
      %c9_96 = arith.constant 9 : index
      %143 = memref.load %arg5[%c9_96] : memref<10xf32, #tpu.memory_space<smem>>
      %cst_97 = arith.constant 2.000000e-02 : f32
      %144 = arith.mulf %cst_97, %143 : f32
      %cst_98 = arith.constant 9.800000e-01 : f32
      %145 = arith.mulf %cst_98, %141 : f32
      %146 = arith.addf %144, %145 : f32
      %c9_99 = arith.constant 9 : index
      %147 = memref.load %arg5[%c9_99] : memref<10xf32, #tpu.memory_space<smem>>
      %148 = arith.select %142, %146, %147 : f32
      %c9_100 = arith.constant 9 : index
      %149 = memref.load %arg7[%c9_100] : memref<10xf32, #tpu.memory_space<smem>>
      memref.store %148, %arg7[%c9_100] : memref<10xf32, #tpu.memory_space<smem>>
      %cst_101 = arith.constant 1.000000e+00 : f32
      %cst_102 = arith.constant 0.000000e+00 : f32
      %150 = arith.select %142, %cst_101, %cst_102 : f32
      %151 = arith.addf %140, %150 : f32
      %cst_103 = arith.constant 1.000000e+00 : f32
      %152 = arith.maximumf %151, %cst_103 : f32
      %cst_104 = arith.constant 9.99999996E-13 : f32
      %153 = arith.maximumf %49, %cst_104 : f32
      %154 = arith.mulf %153, %152 : f32
      %cst_105 = arith.constant 2.000000e+00 : f32
      %155 = arith.divf %cst_105, %154 : f32
      %cst_106 = arith.constant 0.000000e+00 : f32
      %156 = arith.select %43, %155, %cst_106 : f32
      %c0_107 = arith.constant 0 : index
      %157 = memref.load %arg9[%c0_107] : memref<10xf32, #tpu.memory_space<smem>>
      memref.store %156, %arg9[%c0_107] : memref<10xf32, #tpu.memory_space<smem>>
      %cst_108 = arith.constant 9.99999996E-13 : f32
      %158 = arith.maximumf %60, %cst_108 : f32
      %159 = arith.mulf %158, %152 : f32
      %cst_109 = arith.constant 2.000000e+00 : f32
      %160 = arith.divf %cst_109, %159 : f32
      %cst_110 = arith.constant 0.000000e+00 : f32
      %161 = arith.select %54, %160, %cst_110 : f32
      %c1_111 = arith.constant 1 : index
      %162 = memref.load %arg9[%c1_111] : memref<10xf32, #tpu.memory_space<smem>>
      memref.store %161, %arg9[%c1_111] : memref<10xf32, #tpu.memory_space<smem>>
      %cst_112 = arith.constant 9.99999996E-13 : f32
      %163 = arith.maximumf %71, %cst_112 : f32
      %164 = arith.mulf %163, %152 : f32
      %cst_113 = arith.constant 2.000000e+00 : f32
      %165 = arith.divf %cst_113, %164 : f32
      %cst_114 = arith.constant 0.000000e+00 : f32
      %166 = arith.select %65, %165, %cst_114 : f32
      %c2_115 = arith.constant 2 : index
      %167 = memref.load %arg9[%c2_115] : memref<10xf32, #tpu.memory_space<smem>>
      memref.store %166, %arg9[%c2_115] : memref<10xf32, #tpu.memory_space<smem>>
      %cst_116 = arith.constant 9.99999996E-13 : f32
      %168 = arith.maximumf %82, %cst_116 : f32
      %169 = arith.mulf %168, %152 : f32
      %cst_117 = arith.constant 2.000000e+00 : f32
      %170 = arith.divf %cst_117, %169 : f32
      %cst_118 = arith.constant 0.000000e+00 : f32
      %171 = arith.select %76, %170, %cst_118 : f32
      %c3_119 = arith.constant 3 : index
      %172 = memref.load %arg9[%c3_119] : memref<10xf32, #tpu.memory_space<smem>>
      memref.store %171, %arg9[%c3_119] : memref<10xf32, #tpu.memory_space<smem>>
      %cst_120 = arith.constant 9.99999996E-13 : f32
      %173 = arith.maximumf %93, %cst_120 : f32
      %174 = arith.mulf %173, %152 : f32
      %cst_121 = arith.constant 2.000000e+00 : f32
      %175 = arith.divf %cst_121, %174 : f32
      %cst_122 = arith.constant 0.000000e+00 : f32
      %176 = arith.select %87, %175, %cst_122 : f32
      %c4_123 = arith.constant 4 : index
      %177 = memref.load %arg9[%c4_123] : memref<10xf32, #tpu.memory_space<smem>>
      memref.store %176, %arg9[%c4_123] : memref<10xf32, #tpu.memory_space<smem>>
      %cst_124 = arith.constant 9.99999996E-13 : f32
      %178 = arith.maximumf %104, %cst_124 : f32
      %179 = arith.mulf %178, %152 : f32
      %cst_125 = arith.constant 2.000000e+00 : f32
      %180 = arith.divf %cst_125, %179 : f32
      %cst_126 = arith.constant 0.000000e+00 : f32
      %181 = arith.select %98, %180, %cst_126 : f32
      %c5_127 = arith.constant 5 : index
      %182 = memref.load %arg9[%c5_127] : memref<10xf32, #tpu.memory_space<smem>>
      memref.store %181, %arg9[%c5_127] : memref<10xf32, #tpu.memory_space<smem>>
      %cst_128 = arith.constant 9.99999996E-13 : f32
      %183 = arith.maximumf %115, %cst_128 : f32
      %184 = arith.mulf %183, %152 : f32
      %cst_129 = arith.constant 2.000000e+00 : f32
      %185 = arith.divf %cst_129, %184 : f32
      %cst_130 = arith.constant 0.000000e+00 : f32
      %186 = arith.select %109, %185, %cst_130 : f32
      %c6_131 = arith.constant 6 : index
      %187 = memref.load %arg9[%c6_131] : memref<10xf32, #tpu.memory_space<smem>>
      memref.store %186, %arg9[%c6_131] : memref<10xf32, #tpu.memory_space<smem>>
      %cst_132 = arith.constant 9.99999996E-13 : f32
      %188 = arith.maximumf %126, %cst_132 : f32
      %189 = arith.mulf %188, %152 : f32
      %cst_133 = arith.constant 2.000000e+00 : f32
      %190 = arith.divf %cst_133, %189 : f32
      %cst_134 = arith.constant 0.000000e+00 : f32
      %191 = arith.select %120, %190, %cst_134 : f32
      %c7_135 = arith.constant 7 : index
      %192 = memref.load %arg9[%c7_135] : memref<10xf32, #tpu.memory_space<smem>>
      memref.store %191, %arg9[%c7_135] : memref<10xf32, #tpu.memory_space<smem>>
      %cst_136 = arith.constant 9.99999996E-13 : f32
      %193 = arith.maximumf %137, %cst_136 : f32
      %194 = arith.mulf %193, %152 : f32
      %cst_137 = arith.constant 2.000000e+00 : f32
      %195 = arith.divf %cst_137, %194 : f32
      %cst_138 = arith.constant 0.000000e+00 : f32
      %196 = arith.select %131, %195, %cst_138 : f32
      %c8_139 = arith.constant 8 : index
      %197 = memref.load %arg9[%c8_139] : memref<10xf32, #tpu.memory_space<smem>>
      memref.store %196, %arg9[%c8_139] : memref<10xf32, #tpu.memory_space<smem>>
      %cst_140 = arith.constant 9.99999996E-13 : f32
      %198 = arith.maximumf %148, %cst_140 : f32
      %199 = arith.mulf %198, %152 : f32
      %cst_141 = arith.constant 2.000000e+00 : f32
      %200 = arith.divf %cst_141, %199 : f32
      %cst_142 = arith.constant 0.000000e+00 : f32
      %201 = arith.select %142, %200, %cst_142 : f32
      %c9_143 = arith.constant 9 : index
      %202 = memref.load %arg9[%c9_143] : memref<10xf32, #tpu.memory_space<smem>>
      memref.store %201, %arg9[%c9_143] : memref<10xf32, #tpu.memory_space<smem>>
      %cst_144 = arith.constant 0.000000e+00 : f32
      %c0_145 = arith.constant 0 : index
      %203 = memref.load %arg6[%c0_145] : memref<1xf32, #tpu.memory_space<smem>>
      memref.store %cst_144, %arg6[%c0_145] : memref<1xf32, #tpu.memory_space<smem>>
    } else {
    }
    %c1_i32_16 = arith.constant 1 : i32
    %34 = arith.cmpi eq, %arg0, %c1_i32_16 : i32
    %35 = arith.extui %34 : i1 to i32
    %c0_i32_17 = arith.constant 0 : i32
    %36 = arith.cmpi ne, %35, %c0_i32_17 : i32
    scf.if %36 {
      %cst_21 = arith.constant 0.000000e+00 : f32
      %42 = vector.broadcast %cst_21 : f32 to vector<16x128xf32>
      %cst_22 = arith.constant 0.000000e+00 : f32
      %43 = vector.broadcast %cst_22 : f32 to vector<16x128xf32>
      %44 = arith.cmpf oeq, %20, %43 : vector<16x128xf32>
      %45 = arith.extui %44 : vector<16x128xi1> to vector<16x128xi32>
      %46 = arith.sitofp %45 : vector<16x128xi32> to vector<16x128xf32>
      %c0_23 = arith.constant 0 : index
      %47 = memref.load %arg9[%c0_23] : memref<10xf32, #tpu.memory_space<smem>>
      %48 = vector.broadcast %47 : f32 to vector<16x128xf32>
      %49 = arith.mulf %46, %48 : vector<16x128xf32>
      %50 = arith.addf %42, %49 : vector<16x128xf32>
      %cst_24 = arith.constant 1.000000e+00 : f32
      %51 = vector.broadcast %cst_24 : f32 to vector<16x128xf32>
      %52 = arith.cmpf oeq, %20, %51 : vector<16x128xf32>
      %53 = arith.extui %52 : vector<16x128xi1> to vector<16x128xi32>
      %54 = arith.sitofp %53 : vector<16x128xi32> to vector<16x128xf32>
      %c1 = arith.constant 1 : index
      %55 = memref.load %arg9[%c1] : memref<10xf32, #tpu.memory_space<smem>>
      %56 = vector.broadcast %55 : f32 to vector<16x128xf32>
      %57 = arith.mulf %54, %56 : vector<16x128xf32>
      %58 = arith.addf %50, %57 : vector<16x128xf32>
      %cst_25 = arith.constant 2.000000e+00 : f32
      %59 = vector.broadcast %cst_25 : f32 to vector<16x128xf32>
      %60 = arith.cmpf oeq, %20, %59 : vector<16x128xf32>
      %61 = arith.extui %60 : vector<16x128xi1> to vector<16x128xi32>
      %62 = arith.sitofp %61 : vector<16x128xi32> to vector<16x128xf32>
      %c2 = arith.constant 2 : index
      %63 = memref.load %arg9[%c2] : memref<10xf32, #tpu.memory_space<smem>>
      %64 = vector.broadcast %63 : f32 to vector<16x128xf32>
      %65 = arith.mulf %62, %64 : vector<16x128xf32>
      %66 = arith.addf %58, %65 : vector<16x128xf32>
      %cst_26 = arith.constant 3.000000e+00 : f32
      %67 = vector.broadcast %cst_26 : f32 to vector<16x128xf32>
      %68 = arith.cmpf oeq, %20, %67 : vector<16x128xf32>
      %69 = arith.extui %68 : vector<16x128xi1> to vector<16x128xi32>
      %70 = arith.sitofp %69 : vector<16x128xi32> to vector<16x128xf32>
      %c3 = arith.constant 3 : index
      %71 = memref.load %arg9[%c3] : memref<10xf32, #tpu.memory_space<smem>>
      %72 = vector.broadcast %71 : f32 to vector<16x128xf32>
      %73 = arith.mulf %70, %72 : vector<16x128xf32>
      %74 = arith.addf %66, %73 : vector<16x128xf32>
      %cst_27 = arith.constant 4.000000e+00 : f32
      %75 = vector.broadcast %cst_27 : f32 to vector<16x128xf32>
      %76 = arith.cmpf oeq, %20, %75 : vector<16x128xf32>
      %77 = arith.extui %76 : vector<16x128xi1> to vector<16x128xi32>
      %78 = arith.sitofp %77 : vector<16x128xi32> to vector<16x128xf32>
      %c4 = arith.constant 4 : index
      %79 = memref.load %arg9[%c4] : memref<10xf32, #tpu.memory_space<smem>>
      %80 = vector.broadcast %79 : f32 to vector<16x128xf32>
      %81 = arith.mulf %78, %80 : vector<16x128xf32>
      %82 = arith.addf %74, %81 : vector<16x128xf32>
      %cst_28 = arith.constant 5.000000e+00 : f32
      %83 = vector.broadcast %cst_28 : f32 to vector<16x128xf32>
      %84 = arith.cmpf oeq, %20, %83 : vector<16x128xf32>
      %85 = arith.extui %84 : vector<16x128xi1> to vector<16x128xi32>
      %86 = arith.sitofp %85 : vector<16x128xi32> to vector<16x128xf32>
      %c5 = arith.constant 5 : index
      %87 = memref.load %arg9[%c5] : memref<10xf32, #tpu.memory_space<smem>>
      %88 = vector.broadcast %87 : f32 to vector<16x128xf32>
      %89 = arith.mulf %86, %88 : vector<16x128xf32>
      %90 = arith.addf %82, %89 : vector<16x128xf32>
      %cst_29 = arith.constant 6.000000e+00 : f32
      %91 = vector.broadcast %cst_29 : f32 to vector<16x128xf32>
      %92 = arith.cmpf oeq, %20, %91 : vector<16x128xf32>
      %93 = arith.extui %92 : vector<16x128xi1> to vector<16x128xi32>
      %94 = arith.sitofp %93 : vector<16x128xi32> to vector<16x128xf32>
      %c6 = arith.constant 6 : index
      %95 = memref.load %arg9[%c6] : memref<10xf32, #tpu.memory_space<smem>>
      %96 = vector.broadcast %95 : f32 to vector<16x128xf32>
      %97 = arith.mulf %94, %96 : vector<16x128xf32>
      %98 = arith.addf %90, %97 : vector<16x128xf32>
      %cst_30 = arith.constant 7.000000e+00 : f32
      %99 = vector.broadcast %cst_30 : f32 to vector<16x128xf32>
      %100 = arith.cmpf oeq, %20, %99 : vector<16x128xf32>
      %101 = arith.extui %100 : vector<16x128xi1> to vector<16x128xi32>
      %102 = arith.sitofp %101 : vector<16x128xi32> to vector<16x128xf32>
      %c7 = arith.constant 7 : index
      %103 = memref.load %arg9[%c7] : memref<10xf32, #tpu.memory_space<smem>>
      %104 = vector.broadcast %103 : f32 to vector<16x128xf32>
      %105 = arith.mulf %102, %104 : vector<16x128xf32>
      %106 = arith.addf %98, %105 : vector<16x128xf32>
      %cst_31 = arith.constant 8.000000e+00 : f32
      %107 = vector.broadcast %cst_31 : f32 to vector<16x128xf32>
      %108 = arith.cmpf oeq, %20, %107 : vector<16x128xf32>
      %109 = arith.extui %108 : vector<16x128xi1> to vector<16x128xi32>
      %110 = arith.sitofp %109 : vector<16x128xi32> to vector<16x128xf32>
      %c8 = arith.constant 8 : index
      %111 = memref.load %arg9[%c8] : memref<10xf32, #tpu.memory_space<smem>>
      %112 = vector.broadcast %111 : f32 to vector<16x128xf32>
      %113 = arith.mulf %110, %112 : vector<16x128xf32>
      %114 = arith.addf %106, %113 : vector<16x128xf32>
      %cst_32 = arith.constant 9.000000e+00 : f32
      %115 = vector.broadcast %cst_32 : f32 to vector<16x128xf32>
      %116 = arith.cmpf oeq, %20, %115 : vector<16x128xf32>
      %117 = arith.extui %116 : vector<16x128xi1> to vector<16x128xi32>
      %118 = arith.sitofp %117 : vector<16x128xi32> to vector<16x128xf32>
      %c9 = arith.constant 9 : index
      %119 = memref.load %arg9[%c9] : memref<10xf32, #tpu.memory_space<smem>>
      %120 = vector.broadcast %119 : f32 to vector<16x128xf32>
      %121 = arith.mulf %118, %120 : vector<16x128xf32>
      %122 = arith.addf %114, %121 : vector<16x128xf32>
      %cst_33 = arith.constant 0.000000e+00 : f32
      %123 = vector.broadcast %cst_33 : f32 to vector<16x128xf32>
      %124 = arith.maximumf %0, %123 : vector<16x128xf32>
      %125 = arith.mulf %0, %1 : vector<16x128xf32>
      %126 = arith.subf %124, %125 : vector<16x128xf32>
      %cst_34 = arith.constant 0.000000e+00 : f32
      %127 = vector.broadcast %cst_34 : f32 to vector<16x128xf32>
      %128 = arith.cmpf oge, %0, %127 : vector<16x128xf32>
      %cst_35 = arith.constant 1.000000e+00 : f32
      %129 = vector.broadcast %cst_35 : f32 to vector<16x128xf32>
      %130 = arith.subf %129, %7 : vector<16x128xf32>
      %131 = arith.select %128, %7, %130 : vector<16x128xi1>, vector<16x128xf32>
      %132 = math.log %131 : vector<16x128xf32>
      %133 = arith.subf %126, %132 : vector<16x128xf32>
      %c0_36 = arith.constant 0 : index
      %134 = memref.load %arg6[%c0_36] : memref<1xf32, #tpu.memory_space<smem>>
      %135 = arith.mulf %122, %133 : vector<16x128xf32>
      %136 = vector.shape_cast %135 : vector<16x128xf32> to vector<1x16x128xf32>
      %cst_37 = arith.constant dense<0.000000e+00> : vector<1xf32>
      %137 = vector.multi_reduction <add>, %136, %cst_37 [1, 2] : vector<1x16x128xf32> to vector<1xf32>
      %138 = vector.shape_cast %137 : vector<1xf32> to vector<1x1x1xf32>
      %139 = vector.extract %138[0, 0, 0] : f32 from vector<1x1x1xf32>
      %140 = arith.addf %134, %139 : f32
      %c0_38 = arith.constant 0 : index
      %141 = memref.load %arg6[%c0_38] : memref<1xf32, #tpu.memory_space<smem>>
      memref.store %140, %arg6[%c0_38] : memref<1xf32, #tpu.memory_space<smem>>
    } else {
    }
    %c1_i32_18 = arith.constant 1 : i32
    %37 = arith.cmpi eq, %arg0, %c1_i32_18 : i32
    %c0_i32_19 = arith.constant 0 : i32
    %38 = arith.cmpi eq, %arg1, %c0_i32_19 : i32
    %39 = arith.andi %37, %38 : i1
    %40 = arith.extui %39 : i1 to i32
    %c0_i32_20 = arith.constant 0 : i32
    %41 = arith.cmpi ne, %40, %c0_i32_20 : i32
    scf.if %41 {
      %c0_21 = arith.constant 0 : index
      %42 = memref.load %arg6[%c0_21] : memref<1xf32, #tpu.memory_space<smem>>
      %cst_22 = arith.constant 1.000000e+00 : f32
      %43 = arith.mulf %42, %cst_22 : f32
      %c0_23 = arith.constant 0 : index
      %44 = memref.load %arg6[%c0_23] : memref<1xf32, #tpu.memory_space<smem>>
      memref.store %43, %arg6[%c0_23] : memref<1xf32, #tpu.memory_space<smem>>
    } else {
    }
    return
  }
  func.func @transform_0(%arg0: i32, %arg1: i32) -> (i32, i32) {
    %c0_i32 = arith.constant 0 : i32
    %c0_i32_0 = arith.constant 0 : i32
    return %arg1, %c0_i32 : i32, i32
  }
  func.func @transform_1(%arg0: i32, %arg1: i32) -> (i32, i32) {
    %c0_i32 = arith.constant 0 : i32
    %c0_i32_0 = arith.constant 0 : i32
    return %arg1, %c0_i32 : i32, i32
  }
  func.func @transform_2(%arg0: i32, %arg1: i32) -> (i32, i32) {
    %c0_i32 = arith.constant 0 : i32
    %c0_i32_0 = arith.constant 0 : i32
    return %arg1, %c0_i32 : i32, i32
  }
  func.func @transform_3(%arg0: i32, %arg1: i32) -> i32 {
    %c0_i32 = arith.constant 0 : i32
    %c0_i32_0 = arith.constant 0 : i32
    return %c0_i32 : i32
  }
  func.func @transform_4(%arg0: i32, %arg1: i32) -> i32 {
    %c0_i32 = arith.constant 0 : i32
    %c0_i32_0 = arith.constant 0 : i32
    return %c0_i32 : i32
  }
  func.func @transform_5(%arg0: i32, %arg1: i32) -> i32 {
    %c0_i32 = arith.constant 0 : i32
    %c0_i32_0 = arith.constant 0 : i32
    return %c0_i32 : i32
  }
}

</mosaic_0001>

<bundles_post_ra>
// kernel: tpu_custom_call.1
= control target key start
LH: loop header
LB: loop body
LE: loop exit
PB: predicated region body
PF: predicated region fallthrough
CT: control target
= control target key end

     0   :  { %s1928_s0 = inlined_call_operand.hbm [shape: f32[16,128], index: 0, kind: input, shape index: {}]   ;;  %s1929_s1 = inlined_call_operand.hbm [shape: f32[16,128], index: 1, kind: input, shape index: {}]   ;;  %s1930_s2 = inlined_call_operand.hbm [shape: f32[16,128], index: 2, kind: input, shape index: {}]   ;;  %s1931_s3 = inlined_call_operand.vmem [shape: f32[10], index: 3, kind: input, shape index: {}]   ;;  %s1932_s4 = inlined_call_operand.hbm [shape: f32[1], index: 4, kind: output, shape index: {0}]   ;;  %s1933_s5 = inlined_call_operand.hbm [shape: f32[10], index: 5, kind: output, shape index: {1}]  }
   0x1   :  { %1939 = sst [smem:[#allocation23_spill]] %s1928_s0 }
   0x2   :  { %1940 = sst [smem:[#allocation24_spill]] %s1929_s1 }
   0x3   :  { %1941 = sst [smem:[#allocation25_spill]] %s1930_s2 }
   0x4   :  { %1942 = sst [smem:[#allocation26_spill]] %s1931_s3 }
   0x5   :  { %1943 = sst [smem:[#allocation27_spill]] %s1932_s4 }
   0x6   :  { %1944 = sst [smem:[#allocation28_spill]] %s1933_s5 }
   0x7   :  { %11 = vsyncpa [#allocation5], 0 }
   0x8   :  { %12 = vsyncpa [#allocation9], 0 }
   0x9   :  { %13 = vsyncpa [#allocation7], 0 }
   0xa   :  { %14 = vsyncpa [#allocation6], 0 }
   0xb   :  { %15 = vsyncpa [#allocation14], 0  ;;  %s1505_s18 = smov 0   ;;  %s1507_s19 = smov 0  }
   0xc   :  { %s1509_s20 = smov 0  }
   0xd LB: > { %1945 = sst [smem:[#allocation20_spill]] %s1455_s19  ;;  %s1934_s21 = sadd.s32 4294967295, %s1459_s20   ;;  %s1459_s20 = sphi %s1509_s20, %s21_s20   ;;  %s1455_s19 = sphi %s1507_s19, %s1966_s19   ;;  %s1451_s18 = sphi %s1505_s18, %s1965_s18  }
   0xe   : > { %1946 = sst [smem:[#allocation21_spill]] %s1459_s20  ;;  %p1032_p0 = scmp.ge.s32.totalorder %s1459_s20, 1 }
   0xf   : > { %p179_p1 = scmp.lt.s32.totalorder %s1459_s20, 3  ;;  %p1525_p2 = scmp.eq.s32.totalorder %s1934_s21, 0 }
  0x10   : > { %s1461_s24 = smov [#allocation8]   ;;  %s33_s27 = sadd.s32 1, %s1455_s19 }
  0x11   : > { %p1529_p3 = pnand %p1032_p0, %p179_p1  ;;  %s210_s25 = sshll.u32 %s1461_s24, 4  ;;  %s211_s25 = int_to_ptr.vmem [resolvable:$true] %s210_s25 }
  0x12   : > { %p1542_p6 = scmp.ge.s32.totalorder %s33_s27, 2  ;;  %s1462_s29 = smov [#allocation4]  }
  0x13   : > { %p1209_p4 = pneg %p1529_p3  ;;  %s194_s30 = sshll.u32 %s1462_s29, 4  ;;  %s195_s30 = int_to_ptr.vmem [resolvable:$true] %s194_s30 }
  0x14   : > { %s1315_s6 = scalar_lea.vmem %s211_s25, 256  ;;  %p1323_p11 = scmp.lt.s32.totalorder %s211_s25, %s211_s25 }
  0x15   : > { %p1537_p5 = pnand %p1525_p2, %p1209_p4  ;;  %p1316_p8 = scmp.ne.s32.totalorder %s211_s25, %s1315_s6 }
  0x16   : > { %p1324_p12 = scmp.lt.s32.totalorder %s1315_s6, %s1315_s6 }
  0x17   : > { %p1306_p7 = pneg %p1537_p5 }
  0x18   : > { %p1325_p13 = por %p1324_p12, %p1323_p11 }
  0x19   : > { %p1318_p9 = pnand %p1316_p8, %p1306_p7 }
  0x1b   : > { %p1319_p10 = pneg %p1318_p9 }
  0x1d   : > { %p1326_p0 = pnand %p1325_p13, %p1319_p10 }
  0x1f   : > { %1329 = shalt.err (!%p1326_p0)
}
  0x20   : > { %s1463_s7 = smov 128   ;;  %s1464_s8 = smov 8  }
  0x21   : > { %s1951_s1 = sld [smem:[#allocation24_spill]]  ;;  %s1968_s27 = smov (%p1542_p6, %s33_s27), 0 }
  0x22   : > { %1952 = sst [smem:[#allocation22_spill]] %s1968_s27  ;;  %s1341_s11 = scalar_lea.vmem %s195_s30, 256 }
  0x23   : > { %p1342_p1 = scmp.ne.s32.totalorder %s195_s30, %s1341_s11  ;;  %p1349_p9 = scmp.lt.s32.totalorder %s195_s30, %s195_s30 }
  0x24   : > { %p1350_p10 = scmp.lt.s32.totalorder %s1341_s11, %s1341_s11 }
  0x25   : > { %p1344_p4 = pnand %p1342_p1, %p1306_p7 }
  0x26   : > { %p1351_p11 = por %p1350_p10, %p1349_p9 }
  0x27   : > { %1215 = dma.hbm_to_vmem [thread:$0]  (!%p1537_p5), %s1951_s1, 256, %s211_s25, [#allocation9], %s1463_s7, %s1463_s7, %s1464_s8  }
  0x28   : > { %p1345_p8 = pneg %p1344_p4 }
  0x2a   : > { %p1352_p12 = pnand %p1351_p11, %p1345_p8 }
  0x2c   : > { %1355 = shalt.err (!%p1352_p12)
}
  0x2d   : > { %s1953_s0 = sld [smem:[#allocation23_spill]]  ;;  %s1465_s14 = smov [#allocation10]  }
  0x2e   : > { %s226_s15 = sshll.u32 %s1465_s14, 4  ;;  %s1954_s3 = sld [smem:[#allocation26_spill]]  ;;  %s227_s15 = int_to_ptr.vmem [resolvable:$true] %s226_s15 }
  0x2f   : > { %s1367_s25 = scalar_lea.vmem %s227_s15, 256  ;;  %p1375_p1 = scmp.lt.s32.totalorder %s227_s15, %s227_s15 }
  0x30   : > { %p1368_p6 = scmp.ne.s32.totalorder %s227_s15, %s1367_s25  ;;  %p1376_p4 = scmp.lt.s32.totalorder %s1367_s25, %s1367_s25 }
  0x32   : > { %p1370_p13 = pnand %p1368_p6, %p1306_p7  ;;  %p1377_p8 = por %p1376_p4, %p1375_p1 }
  0x33   : > { %1212 = dma.hbm_to_vmem [thread:$0]  (!%p1537_p5), %s1953_s0, 256, %s195_s30, [#allocation5], %s1463_s7, %s1463_s7, %s1464_s8  }
  0x34   : > { %s240_s24 = sshll.u32 %s1954_s3, 4  ;;  %p1371_p0 = pneg %p1370_p13  ;;  %s241_s24 = int_to_ptr.vmem [resolvable:$true] %s240_s24 }
  0x36   : > { %p1378_p9 = pnand %p1377_p8, %p1371_p0 }
  0x38   : > { %1381 = shalt.err (!%p1378_p9)
}
  0x39   : > { %s1955_s2 = sld [smem:[#allocation25_spill]]  ;;  %s1382_s30 = scalar_lea.vmem %s241_s24, 16 }
  0x3a   : > { %p1383_p10 = scmp.ne.s32.totalorder %s241_s24, %s1382_s30  ;;  %p1390_p6 = scmp.lt.s32.totalorder %s241_s24, %s241_s24 }
  0x3b   : > { %p1391_p13 = scmp.lt.s32.totalorder %s1382_s30, %s1382_s30 }
  0x3c   : > { %p1385_p11 = pnand %p1383_p10, %p1306_p7 }
  0x3d   : > { %p1392_p0 = por %p1391_p13, %p1390_p6 }
  0x3e   : > { %p1386_p12 = pneg %p1385_p11 }
  0x3f   : > { %1218 = dma.hbm_to_vmem [thread:$0]  (!%p1537_p5), %s1955_s2, 256, %s227_s15, [#allocation9], %s1463_s7, %s1463_s7, %s1464_s8  }
  0x40   : > { %p1393_p1 = pnand %p1392_p0, %p1386_p12 }
  0x42   : > { %1396 = shalt.err (!%p1393_p1)
}
  0x43   : > { %s1466_s6 = smov [#allocation11]   ;;  %253 = sbr.rel (%p1529_p3) target bundleno = 769 (0x301), region = 36 }
  0x44   : > { %1221 = dma.vmem_to_smem (!%p1537_p5), %s241_s24, 16, %s1466_s6, [#allocation7]  }
  0x48   : > { %1430 = dma.done.wait (%p1525_p2), [#allocation5], 256  }
  0x49   : > { %1432 = vsyncadd (%p1525_p2), [#allocation5], 4294967040 }
  0x4a   : > { %1434 = dma.done.wait (%p1525_p2), [#allocation9], 512  }
  0x4b   : > { %1436 = vsyncadd (%p1525_p2), [#allocation9], 4294966784 }
  0x4c   : > { %1438 = dma.done.wait (%p1525_p2), [#allocation7], 16  }
  0x4d   : > { %1440 = vsyncadd (%p1525_p2), [#allocation7], 4294967280 }
  0x4e   : > { %271 = sfence }
  0x4f   : > { %v1607_v0 = vld [vmem:[#allocation4] sm:$0xff]  ;;  %v1609_v1 = vld [vmem:[#allocation4 + $0x8] sm:$0xff]  ;;  %p321_p3 = scmp.eq.s32.totalorder %s1451_s18, 0  ;;  %s1467_s22 = smov 0.0   ;;  %v1634_v8 = vld [vmem:[#allocation8] sm:$0xff] }
  0x50   : > { %v1042_v2 = vmul.f32 -1.442695, %v1607_v0  ;;  %v1043_v3 = vmul.f32 -1.442695, %v1609_v1  ;;  %v1636_v9 = vld [vmem:[#allocation8 + $0x8] sm:$0xff]  ;;  %v291_v18 = vld [vmem:[#allocation10] sm:$0xff] }
  0x51   : > { %1190 = sst [smem:[#allocation2]] (%p321_p3), %s1467_s22  ;;  %v292_v20 = vld [vmem:[#allocation10 + $0x8] sm:$0xff]  ;;  %vm309_vm0 = vcmp.gt.f32.partialorder %v291_v18, 0.0  ;;  %p1045_p2 = scmp.ne.s32.totalorder %s1451_s18, 0 }
  0x52   : > { %1272 = vpow2.f32 %v1042_v2  ;;  %1191 = sst [smem:[#allocation2 + $0x1]] (%p321_p3), %s1467_s22  ;;  %vm310_vm1 = vcmp.gt.f32.partialorder %v292_v20, 0.0 }
  0x53   : > { %1274 = vpow2.f32 %v1043_v3  ;;  %1192 = sst [smem:[#allocation2 + $0x2]] (%p321_p3), %s1467_s22 }
  0x54   : > { %1193 = sst [smem:[#allocation2 + $0x3]] (%p321_p3), %s1467_s22 }
  0x55   : > { %1194 = sst [smem:[#allocation2 + $0x4]] (%p321_p3), %s1467_s22 }
  0x56   : > { %1195 = sst [smem:[#allocation2 + $0x5]] (%p321_p3), %s1467_s22 }
  0x57   : > { %1196 = sst [smem:[#allocation2 + $0x6]] (%p321_p3), %s1467_s22 }
  0x58   : > { %1197 = sst [smem:[#allocation2 + $0x7]] (%p321_p3), %s1467_s22 }
  0x59   : > { %1198 = sst [smem:[#allocation2 + $0x8]] (%p321_p3), %s1467_s22 }
  0x5a   : > { %1199 = sst [smem:[#allocation2 + $0x9]] (%p321_p3), %s1467_s22 }
  0x5b   : > { %s350_s23 = sld [smem:[#allocation2]] (!%p1045_p2) }
  0x5c   : > { %s1048_s26 = sld [smem:[#allocation2 + $0x1]] (!%p1045_p2) }
  0x5d   : > { %s1051_s7 = sld [smem:[#allocation2 + $0x2]] (!%p1045_p2) }
  0x5e   : > { %s1054_s8 = sld [smem:[#allocation2 + $0x3]] (!%p1045_p2) }
  0x5f   : > { %v1273_v4 = vpop.eup %1272  ;;  %s1057_s9 = sld [smem:[#allocation2 + $0x4]] (!%p1045_p2) }
  0x60   : > { %v1275_v5 = vpop.eup %1274  ;;  %v299_v6 = vadd.f32 1.0, %v1273_v4  ;;  %s1060_s10 = sld [smem:[#allocation2 + $0x5]] (!%p1045_p2) }
  0x61   : > { %v300_v7 = vadd.f32 1.0, %v1275_v5  ;;  %s1063_s11 = sld [smem:[#allocation2 + $0x6]] (!%p1045_p2) }
  0x62   : > { %1276 = vrcp.f32 %v299_v6  ;;  %s1066_s13 = sld [smem:[#allocation2 + $0x7]] (!%p1045_p2) }
  0x63   : > { %1278 = vrcp.f32 %v300_v7  ;;  %s1069_s15 = sld [smem:[#allocation2 + $0x8]] (!%p1045_p2) }
  0x64   : > { %s1072_s17 = sld [smem:[#allocation2 + $0x9]] (!%p1045_p2) }
  0x6f   : > { %v1638_v10 = vpop.eup %1276 }
  0x70   : > { %v1640_v11 = vpop.eup %1278  ;;  %v305_v12 = vsub.f32 %v1638_v10, %v1634_v8 }
  0x71   : > { %v306_v13 = vsub.f32 %v1640_v11, %v1636_v9 }
  0x72   : > { %v307_v14 = vand.u32 2147483647, %v305_v12 }
  0x73   : > { %v308_v15 = vand.u32 2147483647, %v306_v13 }
  0x74   : > { %v311_v16 = vmul.f32 10.0, %v307_v14 }
  0x75   : > { %v312_v17 = vmul.f32 10.0, %v308_v15 }
  0x76   : > { %v313_v19 = vfloor.f32 %v311_v16 }
  0x77   : > { %v314_v21 = vfloor.f32 %v312_v17 }
  0x78   : > { %v315_v22 = vmax.f32 %v313_v19, 0.0 }
  0x79   : > { %v316_v23 = vmax.f32 %v314_v21, 0.0  ;;  %349 = sbr.rel (%p1045_p2) target bundleno = 354 (0x162), region = 60 }
  0x7a   : > { %v317_v24 = vmin.f32 %v315_v22, 9.0 }
  0x7b   : > { %v318_v25 = vmin.f32 %v316_v23, 9.0 }
  0x7c   : > { %v1646_v26 = vsel %vm309_vm0, %v317_v24, -1.0 }
  0x7d   : > { %v1648_v27 = vsel %vm310_vm1, %v318_v25, -1.0 }
  0x7e   : > { %vm391_vm2 = vcmp.eq.f32.partialorder %v1646_v26, 2.0  ;;  %vm392_vm3 = vcmp.eq.f32.partialorder %v1648_v27, 2.0  ;;  %vm351_vm4 = vcmp.eq.f32.partialorder %v1646_v26, 0.0  ;;  %v1468_v28 = vmov 0.0  }
  0x7f   : > { %v1052_v29 = vsel %vm391_vm2, 1.0, %v1468_v28  ;;  %v1053_v30 = vsel %vm392_vm3, 1.0, %v1468_v28  ;;  %vm352_vm5 = vcmp.eq.f32.partialorder %v1648_v27, 0.0  ;;  %v1046_v31 = vsel %vm351_vm4, 1.0, %v1468_v28 }
  0x80   : > { %v397_v32 = vadd.f32 %v1053_v30, %v1052_v29  ;;  %v1047_v33 = vsel %vm352_vm5, 1.0, %v1468_v28  ;;  %vm411_vm6 = vcmp.eq.f32.partialorder %v1646_v26, 3.0  ;;  %vm412_vm7 = vcmp.eq.f32.partialorder %v1648_v27, 3.0 }
  0x81   : > { %v357_v34 = vadd.f32 %v1047_v33, %v1046_v31  ;;  %v1055_v35 = vsel %vm411_vm6, 1.0, %v1468_v28  ;;  %v1056_v36 = vsel %vm412_vm7, 1.0, %v1468_v28  ;;  %vm371_vm8 = vcmp.eq.f32.partialorder %v1646_v26, 1.0 }
  0x82   : > { %398 = vadd.xlane.f32.xlu1 %v397_v32  ;;  %v417_v37 = vadd.f32 %v1056_v36, %v1055_v35  ;;  %vm372_vm9 = vcmp.eq.f32.partialorder %v1648_v27, 1.0  ;;  %v1049_v38 = vsel %vm371_vm8, 1.0, %v1468_v28  ;;  %vm451_vm10 = vcmp.eq.f32.partialorder %v1646_v26, 5.0 }
  0x83   : > { %358 = vadd.xlane.f32.xlu0 %v357_v34  ;;  %v1050_v39 = vsel %vm372_vm9, 1.0, %v1468_v28  ;;  %vm452_vm11 = vcmp.eq.f32.partialorder %v1648_v27, 5.0  ;;  %v1061_v40 = vsel %vm451_vm10, 1.0, %v1468_v28  ;;  %vm431_vm12 = vcmp.eq.f32.partialorder %v1646_v26, 4.0 }
  0x84   : > { %v377_v41 = vadd.f32 %v1050_v39, %v1049_v38  ;;  %v1062_v42 = vsel %vm452_vm11, 1.0, %v1468_v28  ;;  %vm432_vm13 = vcmp.eq.f32.partialorder %v1648_v27, 4.0  ;;  %v1058_v43 = vsel %vm431_vm12, 1.0, %v1468_v28 }
  0x85   : > { %v1059_v44 = vsel %vm432_vm13, 1.0, %v1468_v28  ;;  %vm491_vm14 = vcmp.eq.f32.partialorder %v1646_v26, 7.0  ;;  %vm492_vm15 = vcmp.eq.f32.partialorder %v1648_v27, 7.0  ;;  %v457_v45 = vadd.f32 %v1062_v42, %v1061_v40 }
  0x86   : > { %418 = vadd.xlane.f32.xlu1 %v417_v37  ;;  %vm471_vm0 = vcmp.eq.f32.partialorder %v1646_v26, 6.0  ;;  %v437_v46 = vadd.f32 %v1059_v44, %v1058_v43  ;;  %v1067_v47 = vsel %vm491_vm14, 1.0, %v1468_v28  ;;  %v1068_v48 = vsel %vm492_vm15, 1.0, %v1468_v28 }
  0x87   : > { %378 = vadd.xlane.f32.xlu0 %v377_v41  ;;  %vm472_vm1 = vcmp.eq.f32.partialorder %v1648_v27, 6.0  ;;  %v1064_v49 = vsel %vm471_vm0, 1.0, %v1468_v28  ;;  %vm531_vm2 = vcmp.eq.f32.partialorder %v1646_v26, 9.0  ;;  %vm532_vm3 = vcmp.eq.f32.partialorder %v1648_v27, 9.0 }
  0x88   : > { %v1065_v50 = vsel %vm472_vm1, 1.0, %v1468_v28  ;;  %vm511_vm4 = vcmp.eq.f32.partialorder %v1646_v26, 8.0  ;;  %vm512_vm5 = vcmp.eq.f32.partialorder %v1648_v27, 8.0  ;;  %v497_v51 = vadd.f32 %v1068_v48, %v1067_v47 }
  0x89   : > { %v477_v52 = vadd.f32 %v1065_v50, %v1064_v49  ;;  %v1073_v53 = vsel %vm531_vm2, 1.0, %v1468_v28  ;;  %v1074_v54 = vsel %vm532_vm3, 1.0, %v1468_v28  ;;  %v1070_v55 = vsel %vm511_vm4, 1.0, %v1468_v28 }
  0x8a   : > { %458 = vadd.xlane.f32.xlu1 %v457_v45  ;;  %v1071_v56 = vsel %vm512_vm5, 1.0, %v1468_v28  ;;  %v537_v57 = vadd.f32 %v1074_v54, %v1073_v53 }
  0x8b   : > { %438 = vadd.xlane.f32.xlu0 %v437_v46  ;;  %v517_v58 = vadd.f32 %v1071_v56, %v1070_v55 }
  0x8e   : > { %498 = vadd.xlane.f32.xlu1 %v497_v51 }
  0x8f   : > { %478 = vadd.xlane.f32.xlu0 %v477_v52 }
  0x92   : > { %538 = vadd.xlane.f32.xlu1 %v537_v57 }
  0x93   : > { %518 = vadd.xlane.f32.xlu0 %v517_v58 }
 0x10b   : > { %v399_v59 = vpop.xlane.xlu1 %398 }
 0x10c   : > { %v400_v60 = vrot.slane %v399_v59, 4  ;;  %v359_v61 = vpop.xlane.xlu0 %358 }
 0x10d   : > { %v360_v62 = vrot.slane %v359_v61, 4 }
 0x10e   : > { %v401_v63 = vadd.f32 %v400_v60, %v399_v59 }
 0x10f   : > { %v361_v2 = vadd.f32 %v360_v62, %v359_v61  ;;  %v419_v3 = vpop.xlane.xlu1 %418 }
 0x110   : > { %v402_v4 = vrot.slane %v401_v63, 2  ;;  %v420_v5 = vrot.slane %v419_v3, 4  ;;  %v379_v6 = vpop.xlane.xlu0 %378 }
 0x111   : > { %v362_v7 = vrot.slane %v361_v2, 2  ;;  %v380_v12 = vrot.slane %v379_v6, 4 }
 0x112   : > { %v421_v13 = vadd.f32 %v420_v5, %v419_v3  ;;  %v403_v20 = vadd.f32 %v402_v4, %v401_v63 }
 0x113   : > { %v381_v14 = vadd.f32 %v380_v12, %v379_v6  ;;  %v459_v15 = vpop.xlane.xlu1 %458  ;;  %v363_v16 = vadd.f32 %v362_v7, %v361_v2 }
 0x114   : > { %v422_v17 = vrot.slane %v421_v13, 2  ;;  %v460_v18 = vrot.slane %v459_v15, 4  ;;  %v439_v19 = vpop.xlane.xlu0 %438  ;;  %v404_v35 = vrot.slane %v403_v20, 1 }
 0x115   : > { %v382_v21 = vrot.slane %v381_v14, 2  ;;  %v440_v22 = vrot.slane %v439_v19, 4  ;;  %v364_v23 = vrot.slane %v363_v16, 1 }
 0x116   : > { %v461_v24 = vadd.f32 %v460_v18, %v459_v15  ;;  %v423_v25 = vadd.f32 %v422_v17, %v421_v13  ;;  %v405_v50 = vadd.f32 %v404_v35, %v403_v20 }
 0x117   : > { %v441_v28 = vadd.f32 %v440_v22, %v439_v19  ;;  %v499_v29 = vpop.xlane.xlu1 %498  ;;  %v365_v30 = vadd.f32 %v364_v23, %v363_v16  ;;  %v383_v31 = vadd.f32 %v382_v21, %v381_v14 }
 0x118   : > { %v462_v32 = vrot.slane %v461_v24, 2  ;;  %v500_v33 = vrot.slane %v499_v29, 4  ;;  %v479_v34 = vpop.xlane.xlu0 %478  ;;  %v424_v36 = vrot.slane %v423_v25, 1 }
 0x119   : > { %v442_v37 = vrot.slane %v441_v28, 2  ;;  %v480_v38 = vrot.slane %v479_v34, 4  ;;  %1132 = vpush %v365_v30  ;;  %v384_v39 = vrot.slane %v383_v31, 1 }
 0x11a   : > { %v501_v40 = vadd.f32 %v500_v33, %v499_v29  ;;  %v463_v41 = vadd.f32 %v462_v32, %v461_v24  ;;  %v425_v45 = vadd.f32 %v424_v36, %v423_v25 }
 0x11b   : > { %v481_v42 = vadd.f32 %v480_v38, %v479_v34  ;;  %v539_v43 = vpop.xlane.xlu1 %538  ;;  %v385_v44 = vadd.f32 %v384_v39, %v383_v31  ;;  %v443_v46 = vadd.f32 %v442_v37, %v441_v28 }
 0x11c   : > { %v502_v47 = vrot.slane %v501_v40, 2  ;;  %v540_v48 = vrot.slane %v539_v43, 4  ;;  %v519_v49 = vpop.xlane.xlu0 %518  ;;  %v464_v51 = vrot.slane %v463_v41, 1 }
 0x11d   : > { %v482_v52 = vrot.slane %v481_v42, 2  ;;  %v520_v53 = vrot.slane %v519_v49, 4  ;;  %1134 = vpush %v385_v44  ;;  %v444_v54 = vrot.slane %v443_v46, 1 }
 0x11e   : > { %v541_v55 = vadd.f32 %v540_v48, %v539_v43  ;;  %1136 = vpush %v405_v50  ;;  %v465_v56 = vadd.f32 %v464_v51, %v463_v41  ;;  %v503_v57 = vadd.f32 %v502_v47, %v501_v40 }
 0x11f   : > { %v521_v58 = vadd.f32 %v520_v53, %v519_v49  ;;  %1138 = vpush %v425_v45  ;;  %v445_v59 = vadd.f32 %v444_v54, %v443_v46  ;;  %v483_v60 = vadd.f32 %v482_v52, %v481_v42 }
 0x120   : > { %v542_v61 = vrot.slane %v541_v55, 2  ;;  %v504_v62 = vrot.slane %v503_v57, 1 }
 0x121   : > { %v522_v63 = vrot.slane %v521_v58, 2  ;;  %1140 = vpush %v445_v59  ;;  %v484_v2 = vrot.slane %v483_v60, 1 }
 0x122   : > { %v543_v3 = vadd.f32 %v542_v61, %v541_v55  ;;  %1142 = vpush %v465_v56  ;;  %v505_v4 = vadd.f32 %v504_v62, %v503_v57 }
 0x123   : > { %v523_v5 = vadd.f32 %v522_v63, %v521_v58  ;;  %v485_v6 = vadd.f32 %v484_v2, %v483_v60 }
 0x124   : > { %v544_v7 = vrot.slane %v543_v3, 1 }
 0x125   : > { %1144 = vpush %v485_v6  ;;  %v524_v12 = vrot.slane %v523_v5, 1 }
 0x126   : > { %1146 = vpush %v505_v4  ;;  %v545_v13 = vadd.f32 %v544_v7, %v543_v3 }
 0x127   : > { %v525_v14 = vadd.f32 %v524_v12, %v523_v5 }
 0x129   : > { %1148 = vpush %v525_v14 }
 0x12a   : > { %1150 = vpush %v545_v13 }
 0x14a   : > { %s1133_s12 = spop %1132 }
 0x14b   : > { %s367_s14 = sadd.f32 %s1133_s12, %s350_s23 }
 0x14d   : > { %369 = sst [smem:[#allocation2]] %s367_s14 }
 0x14e   : > { %s1135_s16 = spop %1134 }
 0x14f   : > { %s387_s24 = sadd.f32 %s1135_s16, %s1048_s26  ;;  %s1137_s25 = spop %1136 }
 0x150   : > { %s407_s28 = sadd.f32 %s1137_s25, %s1051_s7  ;;  %s1139_s29 = spop %1138 }
 0x151   : > { %389 = sst [smem:[#allocation2 + $0x1]] %s387_s24 }
 0x152   : > { %409 = sst [smem:[#allocation2 + $0x2]] %s407_s28  ;;  %s1141_s30 = spop %1140 }
 0x153   : > { %s427_s6 = sadd.f32 %s1139_s29, %s1054_s8  ;;  %s1143_s21 = spop %1142 }
 0x154   : > { %s447_s22 = sadd.f32 %s1141_s30, %s1057_s9 }
 0x155   : > { %429 = sst [smem:[#allocation2 + $0x3]] %s427_s6 }
 0x156   : > { %449 = sst [smem:[#allocation2 + $0x4]] %s447_s22  ;;  %s1145_s0 = spop %1144 }
 0x157   : > { %s467_s1 = sadd.f32 %s1143_s21, %s1060_s10  ;;  %s1147_s23 = spop %1146 }
 0x158   : > { %s487_s2 = sadd.f32 %s1145_s0, %s1063_s11 }
 0x159   : > { %469 = sst [smem:[#allocation2 + $0x5]] %s467_s1 }
 0x15a   : > { %489 = sst [smem:[#allocation2 + $0x6]] %s487_s2  ;;  %s1149_s12 = spop %1148 }
 0x15b   : > { %s507_s14 = sadd.f32 %s1147_s23, %s1066_s13  ;;  %s1151_s16 = spop %1150 }
 0x15c   : > { %s527_s26 = sadd.f32 %s1149_s12, %s1069_s15 }
 0x15d   : > { %509 = sst [smem:[#allocation2 + $0x7]] %s507_s14 }
 0x15e   : > { %529 = sst [smem:[#allocation2 + $0x8]] %s527_s26 }
 0x15f   : > { %s547_s7 = sadd.f32 %s1151_s16, %s1072_s17 }
 0x161   : > { %549 = sst [smem:[#allocation2 + $0x9]] %s547_s7 }
 0x162 PF: > { %p550_p5 = scmp.eq.s32.totalorder %s1451_s18, 1 }
 0x163   : > { %s1674_s8 = sld [smem:[#allocation2]] (%p550_p5)  ;;  %s1935_s16 = smov (%p550_p5), 1e-12  }
 0x164   : > { %554 = sbr.rel (!%p550_p5) target bundleno = 501 (0x1f5), region = 64  ;;  %s557_s0 = sld [smem:[#allocation11]] (%p550_p5) }
 0x165   : > { %s1676_s1 = sld [smem:[#allocation2 + $0x1]] (%p550_p5) }
 0x166   : > { %s1678_s2 = sld [smem:[#allocation2 + $0x2]] (%p550_p5) }
 0x167   : > { %s1680_s21 = sld [smem:[#allocation2 + $0x3]] (%p550_p5) }
 0x168   : > { %s1682_s9 = sld [smem:[#allocation2 + $0x4]] (%p550_p5) }
 0x169   : > { %p556_p7 = scmp.gt.f32.partialorder %s1674_s8, 0.0  ;;  %s559_s10 = smul.f32 0.98, %s1674_s8 }
 0x16a   : > { %s558_s11 = smul.f32 0.02, %s557_s0  ;;  %s1686_s13 = sld [smem:[#allocation2 + $0x5]] }
 0x16b   : > { %s564_s15 = scalar_select %p556_p7, 1.0, 0.0 }
 0x16c   : > { %s560_s17 = sadd.f32 %s559_s10, %s558_s11  ;;  %p567_p4 = scmp.gt.f32.partialorder %s1676_s1, 0.0 }
 0x16d   : > { %p578_p8 = scmp.gt.f32.partialorder %s1678_s2, 0.0  ;;  %p589_p9 = scmp.gt.f32.partialorder %s1680_s21, 0.0 }
 0x16e   : > { %s1970_s17 = smov (!%p556_p7, %s560_s17), %s557_s0  ;;  %p600_p10 = scmp.gt.f32.partialorder %s1682_s9, 0.0 }
 0x16f   : > { %s575_s24 = scalar_select %p567_p4, 1.0, 0.0 }
 0x170   : > { %563 = sst [smem:[#allocation13]] %s1970_s17  ;;  %p611_p11 = scmp.gt.f32.partialorder %s1686_s13, 0.0 }
 0x171   : > { %s576_s25 = sadd.f32 %s575_s24, %s564_s15  ;;  %s1710_s7 = smax.f32 %s1935_s16, %s1970_s17 }
 0x172   : > { %s586_s28 = scalar_select %p578_p8, 1.0, 0.0 }
 0x173   : > { %s597_s29 = scalar_select %p589_p9, 1.0, 0.0 }
 0x174   : > { %s587_s30 = sadd.f32 %s586_s28, %s576_s25  ;;  %s570_s10 = smul.f32 0.98, %s1676_s1 }
 0x175   : > { %s608_s6 = scalar_select %p600_p10, 1.0, 0.0 }
 0x176   : > { %s598_s22 = sadd.f32 %s597_s29, %s587_s30  ;;  %s581_s15 = smul.f32 0.98, %s1678_s2 }
 0x177   : > { %s619_s23 = scalar_select %p611_p11, 1.0, 0.0 }
 0x178   : > { %s609_s12 = sadd.f32 %s608_s6, %s598_s22 }
 0x179   : > { %s1707_s14 = sld [smem:[#allocation2 + $0x6]] }
 0x17a   : > { %s620_s26 = sadd.f32 %s619_s23, %s609_s12 }
 0x17b   : > { %s1712_s0 = sld [smem:[#allocation2 + $0x7]] }
 0x17c   : > { %s1715_s11 = sld [smem:[#allocation2 + $0x8]] }
 0x17d   : > { %s1718_s24 = sld [smem:[#allocation2 + $0x9]] }
 0x17e   : > { %s1077_s28 = sld [smem:[#allocation11 + $0x1]] }
 0x17f   : > { %p622_p12 = scmp.gt.f32.partialorder %s1707_s14, 0.0  ;;  %s1723_s17 = sld [smem:[#allocation11 + $0x2]] }
 0x180   : > { %s1725_s30 = sld [smem:[#allocation11 + $0x3]]  ;;  %s625_s4 = smul.f32 0.98, %s1707_s14 }
 0x181   : > { %s630_s22 = scalar_select %p622_p12, 1.0, 0.0 }
 0x182   : > { %p633_p6 = scmp.gt.f32.partialorder %s1712_s0, 0.0  ;;  %p644_p13 = scmp.gt.f32.partialorder %s1715_s11, 0.0 }
 0x183   : > { %s631_s23 = sadd.f32 %s630_s22, %s620_s26  ;;  %p655_p0 = scmp.gt.f32.partialorder %s1718_s24, 0.0 }
 0x184   : > { %s641_s12 = scalar_select %p633_p6, 1.0, 0.0 }
 0x185   : > { %s652_s29 = scalar_select %p644_p13, 1.0, 0.0 }
 0x186   : > { %s642_s25 = sadd.f32 %s641_s12, %s631_s23  ;;  %s569_s16 = smul.f32 0.02, %s1077_s28 }
 0x187   : > { %s663_s3 = scalar_select %p655_p0, 1.0, 0.0 }
 0x188   : > { %s653_s27 = sadd.f32 %s652_s29, %s642_s25  ;;  %s580_s6 = smul.f32 0.02, %s1723_s17 }
 0x189   : > { %s571_s19 = sadd.f32 %s570_s10, %s569_s16  ;;  %s591_s26 = smul.f32 0.02, %s1725_s30 }
 0x18a   : > { %s664_s5 = sadd.f32 %s663_s3, %s653_s27  ;;  %s1470_s22 = smov 1.0  }
 0x18b   : > { %s1972_s19 = smov (!%p567_p4, %s571_s19), %s1077_s28  ;;  %s582_s23 = sadd.f32 %s581_s15, %s580_s6 }
 0x18c   : > { %s1744_s20 = smax.f32 %s1470_s22, %s664_s5  ;;  %574 = sst [smem:[#allocation13 + $0x1]] %s1972_s19 }
 0x18d   : > { %s667_s12 = smul.f32 %s1710_s7, %s1744_s20  ;;  %s1956_s25 = smov 1e-12  }
 0x18e   : > { %s675_s16 = smax.f32 %s1956_s25, %s1972_s19  ;;  %s1957_s10 = smul.f32 0.98, %s1680_s21 }
 0x18f   : > { %v668_v15 = vstv %s667_s12  ;;  %s676_s3 = smul.f32 %s675_s16, %s1744_s20  ;;  %s1083_s27 = sld [smem:[#allocation11 + $0x4]] }
 0x190   : > { %s593_s29 = sadd.f32 %s1957_s10, %s591_s26  ;;  %1280 = vrcp.f32 %v668_v15  ;;  %s1974_s23 = smov (!%p578_p8, %s582_s23), %s1723_s17 }
 0x191   : > { %v677_v16 = vstv %s676_s3  ;;  %585 = sst [smem:[#allocation13 + $0x2]] %s1974_s23  ;;  %s684_s5 = smax.f32 %s1956_s25, %s1974_s23 }
 0x192   : > { %s1976_s29 = smov (!%p589_p9, %s593_s29), %s1725_s30  ;;  %1282 = vrcp.f32 %v677_v16  ;;  %s685_s19 = smul.f32 %s684_s5, %s1744_s20 }
 0x193   : > { %596 = sst [smem:[#allocation13 + $0x3]] %s1976_s29  ;;  %s693_s7 = smax.f32 %s1956_s25, %s1976_s29 }
 0x194   : > { %s1085_s15 = sld [smem:[#allocation11 + $0x5]]  ;;  %v686_v17 = vstv %s685_s19  ;;  %s694_s28 = smul.f32 %s693_s7, %s1744_s20 }
 0x195   : > { %1284 = vrcp.f32 %v686_v17  ;;  %s602_s17 = smul.f32 0.02, %s1083_s27  ;;  %s1762_s6 = sld [smem:[#allocation11 + $0x6]] }
 0x196   : > { %v695_v18 = vstv %s694_s28  ;;  %s1764_s30 = sld [smem:[#allocation11 + $0x7]]  ;;  %s636_s26 = smul.f32 0.98, %s1712_s0 }
 0x197   : > { %1286 = vrcp.f32 %v695_v18  ;;  %s1958_s22 = smul.f32 0.98, %s1682_s9  ;;  %s1770_s16 = sld [smem:[#allocation11 + $0x8]] }
 0x198   : > { %s647_s12 = smul.f32 0.98, %s1715_s11  ;;  %s1471_s3 = smov 0.0  }
 0x199   : > { %s604_s23 = sadd.f32 %s1958_s22, %s602_s17  ;;  %s658_s10 = smul.f32 0.98, %s1718_s24 }
 0x19a   : > { %s613_s29 = smul.f32 0.02, %s1085_s15  ;;  %757 = sst [smem:[#allocation12]] %s1471_s3 }
 0x19b   : > { %s1978_s23 = smov (!%p600_p10, %s604_s23), %s1083_s27  ;;  %s1959_s7 = smul.f32 0.98, %s1686_s13 }
 0x19c   : > { %607 = sst [smem:[#allocation13 + $0x4]] %s1978_s23  ;;  %s702_s5 = smax.f32 %s1956_s25, %s1978_s23 }
 0x19d   : > { %v1281_v19 = vpop.eup %1280  ;;  %s703_s19 = smul.f32 %s702_s5, %s1744_s20  ;;  %s615_s28 = sadd.f32 %s1959_s7, %s613_s29 }
 0x19e   : > { %1152 = vpush %v1281_v19  ;;  %s624_s17 = smul.f32 0.02, %s1762_s6  ;;  %s1780_s22 = sld [smem:[#allocation11 + $0x9]] }
 0x19f   : > { %v1283_v20 = vpop.eup %1282  ;;  %v704_v21 = vstv %s703_s19  ;;  %s1980_s28 = smov (!%p611_p11, %s615_s28), %s1085_s15  ;;  %s635_s23 = smul.f32 0.02, %s1764_s30 }
 0x1a0   : > { %1154 = vpush %v1283_v20  ;;  %1288 = vrcp.f32 %v704_v21  ;;  %s626_s27 = sadd.f32 %s625_s4, %s624_s17  ;;  %s711_s29 = smax.f32 %s1956_s25, %s1980_s28 }
 0x1a1   : > { %618 = sst [smem:[#allocation13 + $0x5]] %s1980_s28  ;;  %s712_s3 = smul.f32 %s711_s29, %s1744_s20 }
 0x1a2   : > { %s637_s5 = sadd.f32 %s636_s26, %s635_s23  ;;  %v1285_v22 = vpop.eup %1284  ;;  %s1982_s27 = smov (!%p622_p12, %s626_s27), %s1762_s6 }
 0x1a3   : > { %1156 = vpush %v1285_v22  ;;  %v713_v23 = vstv %s712_s3  ;;  %629 = sst [smem:[#allocation13 + $0x6]] %s1982_s27  ;;  %s720_s4 = smax.f32 %s1956_s25, %s1982_s27 }
 0x1a4   : > { %s1984_s5 = smov (!%p633_p6, %s637_s5), %s1764_s30  ;;  %v1287_v24 = vpop.eup %1286  ;;  %1290 = vrcp.f32 %v713_v23  ;;  %s721_s15 = smul.f32 %s720_s4, %s1744_s20 }
 0x1a5   : > { %1158 = vpush %v1287_v24  ;;  %640 = sst [smem:[#allocation13 + $0x7]] %s1984_s5  ;;  %s729_s6 = smax.f32 %s1956_s25, %s1984_s5 }
 0x1a6   : > { %s646_s26 = smul.f32 0.02, %s1770_s16  ;;  %v722_v25 = vstv %s721_s15 }
 0x1a7   : > { %s730_s19 = smul.f32 %s729_s6, %s1744_s20  ;;  %1292 = vrcp.f32 %v722_v25 }
 0x1a8   : > { %s648_s30 = sadd.f32 %s647_s12, %s646_s26  ;;  %s657_s7 = smul.f32 0.02, %s1780_s22 }
 0x1a9   : > { %v731_v28 = vstv %s730_s19 }
 0x1aa   : > { %1294 = vrcp.f32 %v731_v28  ;;  %s1986_s30 = smov (!%p644_p13, %s648_s30), %s1770_s16  ;;  %s659_s28 = sadd.f32 %s658_s10, %s657_s7 }
 0x1ab   : > { %651 = sst [smem:[#allocation13 + $0x8]] %s1986_s30  ;;  %s738_s17 = smax.f32 %s1956_s25, %s1986_s30 }
 0x1ac   : > { %s739_s27 = smul.f32 %s738_s17, %s1744_s20  ;;  %s1988_s28 = smov (!%p655_p0, %s659_s28), %s1780_s22 }
 0x1ad   : > { %v1289_v29 = vpop.eup %1288  ;;  %662 = sst [smem:[#allocation13 + $0x9]] %s1988_s28  ;;  %s747_s12 = smax.f32 %s1956_s25, %s1988_s28 }
 0x1ae   : > { %1160 = vpush %v1289_v29  ;;  %v740_v30 = vstv %s739_s27  ;;  %s748_s23 = smul.f32 %s747_s12, %s1744_s20 }
 0x1af   : > { %1296 = vrcp.f32 %v740_v30 }
 0x1b0   : > { %v749_v32 = vstv %s748_s23 }
 0x1b1   : > { %v1291_v31 = vpop.eup %1290  ;;  %1298 = vrcp.f32 %v749_v32 }
 0x1b2   : > { %1162 = vpush %v1291_v31 }
 0x1b4   : > { %v1293_v33 = vpop.eup %1292 }
 0x1b5   : > { %1164 = vpush %v1293_v33 }
 0x1b7   : > { %v1295_v34 = vpop.eup %1294 }
 0x1b8   : > { %1166 = vpush %v1295_v34 }
 0x1bc   : > { %v1297_v35 = vpop.eup %1296 }
 0x1bd   : > { %1168 = vpush %v1297_v35 }
 0x1be   : > { %v1299_v36 = vpop.eup %1298 }
 0x1bf   : > { %1170 = vpush %v1299_v36 }
 0x1cf   : > { %s1153_s16 = spop %1152 }
 0x1d0   : > { %s671_s10 = smul.f32 2.0, %s1153_s16 }
 0x1d1   : > { %s1155_s25 = spop %1154 }
 0x1d2   : > { %s1990_s10 = smov (!%p556_p7, %s671_s10), 0.0  ;;  %s680_s20 = smul.f32 2.0, %s1155_s25 }
 0x1d3   : > { %674 = sst [smem:[#allocation3]] %s1990_s10 }
 0x1d4   : > { %s1992_s20 = smov (!%p567_p4, %s680_s20), 0.0  ;;  %s1157_s22 = spop %1156 }
 0x1d5   : > { %683 = sst [smem:[#allocation3 + $0x1]] %s1992_s20  ;;  %s689_s29 = smul.f32 2.0, %s1157_s22 }
 0x1d6   : > { %s1159_s3 = spop %1158 }
 0x1d7   : > { %s1994_s29 = smov (!%p578_p8, %s689_s29), 0.0  ;;  %s698_s5 = smul.f32 2.0, %s1159_s3 }
 0x1d8   : > { %692 = sst [smem:[#allocation3 + $0x2]] %s1994_s29 }
 0x1d9   : > { %s1996_s5 = smov (!%p589_p9, %s698_s5), 0.0 }
 0x1da   : > { %701 = sst [smem:[#allocation3 + $0x3]] %s1996_s5 }
 0x1df   : > { %s1161_s8 = spop %1160 }
 0x1e0   : > { %s707_s4 = smul.f32 2.0, %s1161_s8 }
 0x1e2   : > { %s1998_s4 = smov (!%p600_p10, %s707_s4), 0.0 }
 0x1e3   : > { %710 = sst [smem:[#allocation3 + $0x4]] %s1998_s4  ;;  %s1163_s1 = spop %1162 }
 0x1e4   : > { %s716_s15 = smul.f32 2.0, %s1163_s1 }
 0x1e6   : > { %s2000_s15 = smov (!%p611_p11, %s716_s15), 0.0  ;;  %s1165_s2 = spop %1164 }
 0x1e7   : > { %719 = sst [smem:[#allocation3 + $0x5]] %s2000_s15  ;;  %s725_s6 = smul.f32 2.0, %s1165_s2 }
 0x1e9   : > { %s1167_s26 = spop %1166  ;;  %s2002_s6 = smov (!%p622_p12, %s725_s6), 0.0 }
 0x1ea   : > { %s734_s21 = smul.f32 2.0, %s1167_s26  ;;  %728 = sst [smem:[#allocation3 + $0x6]] %s2002_s6 }
 0x1ec   : > { %s2004_s21 = smov (!%p633_p6, %s734_s21), 0.0 }
 0x1ed   : > { %737 = sst [smem:[#allocation3 + $0x7]] %s2004_s21 }
 0x1ee   : > { %s1169_s9 = spop %1168 }
 0x1ef   : > { %s743_s19 = smul.f32 2.0, %s1169_s9 }
 0x1f0   : > { %s1171_s30 = spop %1170 }
 0x1f1   : > { %s2006_s19 = smov (!%p644_p13, %s743_s19), 0.0  ;;  %s752_s13 = smul.f32 2.0, %s1171_s30 }
 0x1f2   : > { %746 = sst [smem:[#allocation3 + $0x8]] %s2006_s19 }
 0x1f3   : > { %s2008_s13 = smov (!%p655_p0, %s752_s13), 0.0 }
 0x1f4   : > { %755 = sst [smem:[#allocation3 + $0x9]] %s2008_s13 }
 0x1f5 PF: > { %p1094_p1 = scmp.ne.s32.totalorder %s1451_s18, 1 }
 0x1f6   : > { %s767_s14 = sld [smem:[#allocation3]] (!%p1094_p1) }
 0x1f7   : > { %760 = sbr.rel (%p1094_p1) target bundleno = 752 (0x2f0), region = 68  ;;  %s1099_s0 = sld [smem:[#allocation3 + $0x1]] (!%p1094_p1) }
 0x1f8   : > { %s1102_s11 = sld [smem:[#allocation3 + $0x2]] (!%p1094_p1) }
 0x1f9   : > { %s1842_s24 = sld [smem:[#allocation3 + $0x3]] (!%p1094_p1) }
 0x1fa   : > { %s1847_s7 = sld [smem:[#allocation3 + $0x4]] (!%p1094_p1) }
 0x1fb   : > { %s1856_s28 = sld [smem:[#allocation3 + $0x5]] (!%p1094_p1) }
 0x1fc   : > { %vm761_vm6 = vcmp.eq.f32.partialorder %v1646_v26, 0.0  ;;  %vm762_vm7 = vcmp.eq.f32.partialorder %v1648_v27, 0.0  ;;  %vm773_vm8 = vcmp.eq.f32.partialorder %v1646_v26, 1.0  ;;  %vm774_vm9 = vcmp.eq.f32.partialorder %v1648_v27, 1.0  ;;  %s1864_s17 = sld [smem:[#allocation3 + $0x6]] }
 0x1fd   : > { %vm785_vm10 = vcmp.eq.f32.partialorder %v1646_v26, 2.0  ;;  %vm786_vm11 = vcmp.eq.f32.partialorder %v1648_v27, 2.0  ;;  %v1472_v37 = vmov 0.0   ;;  %vm797_vm12 = vcmp.eq.f32.partialorder %v1646_v26, 3.0  ;;  %s1871_s27 = sld [smem:[#allocation3 + $0x7]] }
 0x1fe   : > { %v1095_v38 = vsel %vm761_vm6, 1.0, %v1472_v37  ;;  %v1096_v39 = vsel %vm762_vm7, 1.0, %v1472_v37  ;;  %v1097_v40 = vsel %vm773_vm8, 1.0, %v1472_v37  ;;  %v1098_v41 = vsel %vm774_vm9, 1.0, %v1472_v37  ;;  %s1878_s12 = sld [smem:[#allocation3 + $0x8]] }
 0x1ff   : > { %v768_v42 = vstv %s767_s14  ;;  %v1100_v43 = vsel %vm785_vm10, 1.0, %v1472_v37  ;;  %v1101_v44 = vsel %vm786_vm11, 1.0, %v1472_v37  ;;  %vm798_vm13 = vcmp.eq.f32.partialorder %v1648_v27, 3.0  ;;  %s1888_s23 = sld [smem:[#allocation3 + $0x9]] }
 0x200   : > { %v769_v45 = vmul.f32 %v1095_v38, %v768_v42  ;;  %v770_v46 = vmul.f32 %v1096_v39, %v768_v42  ;;  %v780_v47 = vstv %s1099_s0  ;;  %v1103_v48 = vsel %vm797_vm12, 1.0, %v1472_v37  ;;  %s899_s16 = sld [smem:[#allocation12]] }
 0x201   : > { %v781_v49 = vmul.f32 %v1097_v40, %v780_v47  ;;  %v782_v50 = vmul.f32 %v1098_v41, %v780_v47  ;;  %v792_v51 = vstv %s1102_s11  ;;  %vm809_vm14 = vcmp.eq.f32.partialorder %v1646_v26, 4.0 }
 0x202   : > { %v793_v52 = vmul.f32 %v1100_v43, %v792_v51  ;;  %v794_v53 = vmul.f32 %v1101_v44, %v792_v51  ;;  %v1104_v54 = vsel %vm798_vm13, 1.0, %v1472_v37  ;;  %v804_v55 = vstv %s1842_s24 }
 0x203   : > { %v783_v56 = vadd.f32 %v781_v49, %v769_v45  ;;  %v784_v57 = vadd.f32 %v782_v50, %v770_v46  ;;  %vm810_vm15 = vcmp.eq.f32.partialorder %v1648_v27, 4.0  ;;  %v805_v58 = vmul.f32 %v1103_v48, %v804_v55 }
 0x204   : > { %v1106_v59 = vsel %vm809_vm14, 1.0, %v1472_v37  ;;  %vm821_vm0 = vcmp.eq.f32.partialorder %v1646_v26, 5.0  ;;  %v806_v62 = vmul.f32 %v1104_v54, %v804_v55  ;;  %v816_v63 = vstv %s1847_s7 }
 0x205   : > { %v795_v60 = vadd.f32 %v793_v52, %v783_v56  ;;  %v796_v61 = vadd.f32 %v794_v53, %v784_v57  ;;  %v1107_v2 = vsel %vm810_vm15, 1.0, %v1472_v37  ;;  %vm822_vm1 = vcmp.eq.f32.partialorder %v1648_v27, 5.0 }
 0x206   : > { %v817_v4 = vmul.f32 %v1106_v59, %v816_v63  ;;  %v1109_v5 = vsel %vm821_vm0, 1.0, %v1472_v37  ;;  %v818_v7 = vmul.f32 %v1107_v2, %v816_v63  ;;  %v828_v12 = vstv %s1856_s28 }
 0x207   : > { %v807_v3 = vadd.f32 %v805_v58, %v795_v60  ;;  %v808_v6 = vadd.f32 %v806_v62, %v796_v61  ;;  %vm833_vm2 = vcmp.eq.f32.partialorder %v1646_v26, 6.0  ;;  %v1110_v13 = vsel %vm822_vm1, 1.0, %v1472_v37 }
 0x208   : > { %vm834_vm3 = vcmp.eq.f32.partialorder %v1648_v27, 6.0  ;;  %v829_v15 = vmul.f32 %v1109_v5, %v828_v12  ;;  %v1112_v16 = vsel %vm833_vm2, 1.0, %v1472_v37  ;;  %v830_v18 = vmul.f32 %v1110_v13, %v828_v12 }
 0x209   : > { %v819_v14 = vadd.f32 %v817_v4, %v807_v3  ;;  %v820_v17 = vadd.f32 %v818_v7, %v808_v6  ;;  %v840_v19 = vstv %s1864_s17  ;;  %vm845_vm4 = vcmp.eq.f32.partialorder %v1646_v26, 7.0 }
 0x20a   : > { %v1113_v20 = vsel %vm834_vm3, 1.0, %v1472_v37  ;;  %vm887_vm5 = vcmp.ge.f32.partialorder %v1607_v0, 0.0  ;;  %vm846_vm6 = vcmp.eq.f32.partialorder %v1648_v27, 7.0  ;;  %vm888_vm7 = vcmp.ge.f32.partialorder %v1609_v1, 0.0 }
 0x20b   : > { %v889_v21 = vsub.f32 1.0, %v1638_v10  ;;  %v831_v22 = vadd.f32 %v829_v15, %v819_v14  ;;  %v841_v23 = vmul.f32 %v1112_v16, %v840_v19  ;;  %v1115_v24 = vsel %vm845_vm4, 1.0, %v1472_v37 }
 0x20c   : > { %v890_v25 = vsub.f32 1.0, %v1640_v11  ;;  %v832_v28 = vadd.f32 %v830_v18, %v820_v17  ;;  %v842_v29 = vmul.f32 %v1113_v20, %v840_v19  ;;  %v852_v30 = vstv %s1871_s27 }
 0x20d   : > { %v891_v31 = vsel %vm887_vm5, %v1638_v10, %v889_v21  ;;  %v1116_v32 = vsel %vm846_vm6, 1.0, %v1472_v37  ;;  %vm857_vm8 = vcmp.eq.f32.partialorder %v1646_v26, 8.0  ;;  %vm858_vm9 = vcmp.eq.f32.partialorder %v1648_v27, 8.0 }
 0x20e   : > { %v892_v33 = vsel %vm888_vm7, %v1640_v11, %v890_v25  ;;  %1300 = vlog2.f32 %v891_v31  ;;  %v843_v34 = vadd.f32 %v841_v23, %v831_v22  ;;  %v853_v35 = vmul.f32 %v1115_v24, %v852_v30 }
 0x20f   : > { %1302 = vlog2.f32 %v892_v33  ;;  %v844_v36 = vadd.f32 %v842_v29, %v832_v28  ;;  %v854_v38 = vmul.f32 %v1116_v32, %v852_v30  ;;  %v1118_v39 = vsel %vm857_vm8, 1.0, %v1472_v37 }
 0x210   : > { %v864_v40 = vstv %s1878_s12  ;;  %v1119_v10 = vsel %vm858_vm9, 1.0, %v1472_v37  ;;  %vm869_vm10 = vcmp.eq.f32.partialorder %v1646_v26, 9.0  ;;  %vm870_vm11 = vcmp.eq.f32.partialorder %v1648_v27, 9.0 }
 0x211   : > { %v855_v41 = vadd.f32 %v853_v35, %v843_v34  ;;  %v865_v11 = vmul.f32 %v1118_v39, %v864_v40  ;;  %v856_v42 = vadd.f32 %v854_v38, %v844_v36  ;;  %v866_v43 = vmul.f32 %v1119_v10, %v864_v40 }
 0x212   : > { %v1121_v44 = vsel %vm869_vm10, 1.0, %v1472_v37  ;;  %v876_v45 = vstv %s1888_s23  ;;  %v1122_v46 = vsel %vm870_vm11, 1.0, %v1472_v37  ;;  %v881_v47 = vmax.f32 %v1607_v0, 0.0 }
 0x213   : > { %v883_v48 = vmul.f32 %v1634_v8, %v1607_v0  ;;  %v882_v49 = vmax.f32 %v1609_v1, 0.0  ;;  %v884_v26 = vmul.f32 %v1636_v9, %v1609_v1  ;;  %v867_v27 = vadd.f32 %v865_v11, %v855_v41 }
 0x214   : > { %v877_v50 = vmul.f32 %v1121_v44, %v876_v45  ;;  %v868_v51 = vadd.f32 %v866_v43, %v856_v42  ;;  %v878_v52 = vmul.f32 %v1122_v46, %v876_v45 }
 0x215   : > { %v885_v53 = vsub.f32 %v881_v47, %v883_v48  ;;  %v886_v55 = vsub.f32 %v882_v49, %v884_v26 }
 0x216   : > { %v879_v57 = vadd.f32 %v877_v50, %v867_v27  ;;  %v880_v58 = vadd.f32 %v878_v52, %v868_v51 }
 0x21b   : > { %v1301_v54 = vpop.eup %1300 }
 0x21c   : > { %v1303_v56 = vpop.eup %1302  ;;  %v894_v37 = vmul.f32 0.6931472, %v1301_v54 }
 0x21d   : > { %v896_v59 = vmul.f32 0.6931472, %v1303_v56 }
 0x21e   : > { %v897_v60 = vsub.f32 %v885_v53, %v894_v37 }
 0x21f   : > { %v898_v61 = vsub.f32 %v886_v55, %v896_v59 }
 0x220   : > { %v900_v0 = vmul.f32 %v897_v60, %v879_v57 }
 0x221   : > { %v901_v8 = vmul.f32 %v898_v61, %v880_v58 }
 0x223   : > { %v902_v62 = vadd.f32 %v901_v8, %v900_v0 }
 0x225   : > { %903 = vadd.xlane.f32.xlu0 %v902_v62 }
 0x2ae   : > { %v904_v63 = vpop.xlane.xlu0 %903 }
 0x2af   : > { %v905_v1 = vrot.slane %v904_v63, 4 }
 0x2b1   : > { %v906_v9 = vadd.f32 %v905_v1, %v904_v63 }
 0x2b3   : > { %v907_v2 = vrot.slane %v906_v9, 2 }
 0x2b5   : > { %v908_v3 = vadd.f32 %v907_v2, %v906_v9 }
 0x2b7   : > { %v909_v4 = vrot.slane %v908_v3, 1 }
 0x2b9   : > { %v910_v5 = vadd.f32 %v909_v4, %v908_v3 }
 0x2bb   : > { %1172 = vpush %v910_v5 }
 0x2ec   : > { %s1173_s10 = spop %1172 }
 0x2ed   : > { %s912_s25 = sadd.f32 %s1173_s10, %s899_s16 }
 0x2ef   : > { %914 = sst [smem:[#allocation12]] %s912_s25 }
 0x2f0 PF: > { %s917_s20 = sld [smem:[#allocation12]]  ;;  %s1473_s3 = smov [#allocation13]  }
 0x2f1   : > { %s1960_s22 = sld [smem:[#allocation21_spill]]  ;;  %s1474_s1 = smov [#allocation12]  }
 0x2f2   : > { %s1962_s4 = sld [smem:[#allocation28_spill]] }
 0x2f3   : > { %s1963_s6 = sld [smem:[#allocation27_spill]] }
 0x2f6   : > { %1200 = sst [smem:[#allocation12]] (%p550_p5), %s917_s20 }
 0x2f7   : > { %s1961_s29 = sadd.s32 4294967295, %s1960_s22  }
 0x2f8   : > { %p1230_p3 = scmp.eq.s32.totalorder %s1961_s29, 1 }
 0x2fa   : > { %1204 = dma.smem_to_hbm (%p1230_p3), %s1473_s3, 16, %s1962_s4, [#allocation14]  }
 0x2fb   : > { %1202 = dma.smem_to_hbm (%p1230_p3), %s1474_s1, 16, %s1963_s6, [#allocation6]  }
 0x2fc   : > { %1442 = dma.done.wait (%p1230_p3), [#allocation6], 16  }
 0x2fd   : > { %1444 = vsyncadd (%p1230_p3), [#allocation6], 4294967280 }
 0x2fe   : > { %1446 = dma.done.wait (%p1230_p3), [#allocation14], 16  }
 0x2ff   : > { %1448 = vsyncadd (%p1230_p3), [#allocation14], 4294967280 }
 0x300   : > { %946 = sfence }
 0x301 PF: > { %s1964_s26 = sld [smem:[#allocation21_spill]] }
 0x302   : > { %s1965_s18 = sld [smem:[#allocation20_spill]] }
 0x303   : > { %s1966_s19 = sld [smem:[#allocation22_spill]] }
 0x307   : > { %s21_s20 = sadd.s32 1, %s1964_s26  }
 0x308   : > { %p18_p2 = scmp.ge.s32.totalorder %s21_s20, 4  }
 0x30a   :  { %20 = sbr.rel (!%p18_p2) target bundleno = 13 (0xd), region = 152 }
 0x30f   :  { %952 = vsyncpa [#allocation5], 1 }
 0x310   :  { %954 = vsyncpa [#allocation5 + $0x1], 1 }
 0x311   :  { %955 = vsyncpa [#allocation9], 1 }
 0x312   :  { %956 = vsyncpa [#allocation6], 1 }
 0x313   :  { %958 = vsyncpa [#allocation6 + $0x1], 1 }
 0x314   :  { %959 = vsyncpa [#allocation14], 1 }
 0x315   :  { %960 = vsyncpa [#allocation7], 1 }
 0x316   :  { %962 = vsyncpa [#allocation7 + $0x1], 1 }

</bundles_post_ra>
